<compile_context>
chip_gen: v5e
topology: v5e:2x2
jax: 0.10.0
libtpu: 0.0.40
codegen_flags: <defaults>
</compile_context>

<pallas_src>
import jax
import jax.numpy as jnp
from jax.experimental import pallas as pl
from jax.experimental.pallas import tpu as pltpu


def _round_up(x, m):
    return ((x + m - 1) // m) * m


def node_embed_kernel(src_ref, nbr_ref, vals_ref,
                      w_gcn_ref, w1ab_ref, w1c_ref, b1_ref,
                      w2_ref, b2_ref, out_ref):
    """One grid step == one (block_b,)-tile of nodes."""
    f32 = jnp.float32

    # --- NeighborAggregator(aggr='mean'): reduce over neighbors BEFORE matmul ---
    nbr = nbr_ref[...].astype(f32)                      # (tb, N, D_in)
    aggr = jnp.mean(nbr, axis=1)                        # (tb, D_in)
    src = src_ref[...].astype(f32)                      # (tb, D_in)

    # --- fused SageGCN: [src | aggr] @ blockdiag(w_self, w_agg)
    #     == [self_hidden | neighbor_hidden]   (one MXU call instead of two) ---
    w_gcn = w_gcn_ref[...]
    lhs = jnp.concatenate([src, aggr], axis=-1)         # (tb, 2*D_in)
    gcn = jnp.dot(lhs.astype(w_gcn.dtype), w_gcn,
                  preferred_element_type=f32)           # (tb, 2*D_out)
    h = jnp.maximum(gcn, 0.0)                           # SageGCN ReLU (f32)

    # scalar path: relu(mean(neighbor_node_values)) per node -> rank-1 update.
    h_val = jnp.maximum(
        jnp.mean(vals_ref[...].astype(f32), axis=1, keepdims=True), 0.0)  # (tb, 1)

    # --- lin1 + ReLU  (split matmul + rank-1 is exactly concat -> Linear) ---
    w1ab = w1ab_ref[...]
    h1 = (jnp.dot(h.astype(w1ab.dtype), w1ab, preferred_element_type=f32)
          + h_val * w1c_ref[...]
          + b1_ref[...])                                # (tb, H)
    h1 = jnp.maximum(h1, 0.0)

    # --- lin2 + exp ---
    w2 = w2_ref[...]
    out = jnp.dot(h1.astype(w2.dtype), w2, preferred_element_type=f32) + b2_ref[...]
    out_ref[...] = jnp.exp(out).astype(out_ref.dtype)


def node_embed_forward(src_node_features, neighbor_node_features,
                       neighbor_node_values, params, *,
                       block_b=128, compute_dtype=jnp.float32):
    """NodeEmbed forward.

    Accepts either the original single-node signature
        src (D_in,), nbr (N, D_in), vals (N,)          -> (output_size,)
    or a node-batched one
        src (B, D_in), nbr (B, N, D_in), vals (B, N)   -> (B, output_size)

    `compute_dtype=jnp.bfloat16` narrows the matmul operands / streamed
    features (v6e/v7x roofline win); the epilogue stays float32.
    """
    squeeze = src_node_features.ndim == 1
    if squeeze:
        src_node_features = src_node_features[None]
        neighbor_node_features = neighbor_node_features[None]
        neighbor_node_values = neighbor_node_values[None]

    b, d_in = src_node_features.shape
    _, n, _ = neighbor_node_features.shape

    w_agg = params["w_agg"]          # (D_in, D_out)   aggregator weight
    w_self = params["w_self"]        # (D_in, D_out)   SageGCN self weight
    w1t = params["w1t"]              # (2*D_out+1, H)  lin1 weight (transposed)
    b1 = params["b1"]                # (H,)
    w2t = params["w2t"]              # (H, O)          lin2 weight (transposed)
    b2 = params["b2"]                # (O,)

    d_out = w_agg.shape[1]
    hidden = w1t.shape[1]
    out_sz = w2t.shape[1]
    assert w1t.shape[0] == 2 * d_out + 1, (
        "lin1 input_size must equal 2*output_dim + 1 "
        "(concat of [self_hidden | neighbor_hidden | mean(vals)])")

    # Host-side block-diagonal GCN weight: [src | aggr] @ w_bd = [self_h | neigh_h].
    w_bd = jnp.zeros((2 * d_in, 2 * d_out), jnp.float32)
    w_bd = w_bd.at[:d_in, :d_out].set(w_self.astype(jnp.float32))
    w_bd = w_bd.at[d_in:, d_out:].set(w_agg.astype(jnp.float32))

    w1ab = w1t[:2 * d_out, :].astype(jnp.float32)       # (2*D_out, H)
    w1c = w1t[2 * d_out:, :].astype(jnp.float32)        # (1, H) -- stays f32
    b1_2d = b1.reshape(1, hidden).astype(jnp.float32)
    b2_2d = b2.reshape(1, out_sz).astype(jnp.float32)

    # Matmul operands / streamed features may be narrowed; epilogue stays f32.
    src2d = src_node_features.astype(compute_dtype)
    nbr3d = neighbor_node_features.astype(compute_dtype)
    vals2d = neighbor_node_values.astype(jnp.float32)
    w_bd = w_bd.astype(compute_dtype)
    w1ab = w1ab.astype(compute_dtype)
    w2t_c = w2t.astype(compute_dtype)

    # Pad the node batch to a multiple of the block size (sublane-aligned).
    bb = min(block_b, _round_up(b, 8))
    bp = _round_up(b, bb)
    if bp != b:
        pad = bp - b
        src2d = jnp.pad(src2d, ((0, pad), (0, 0)))
        nbr3d = jnp.pad(nbr3d, ((0, pad), (0, 0), (0, 0)))
        vals2d = jnp.pad(vals2d, ((0, pad), (0, 0)))

    const = lambda i: (0, 0)   # weights: same block every step -> VMEM-resident

    out = pl.pallas_call(
        node_embed_kernel,
        out_shape=jax.ShapeDtypeStruct((bp, out_sz), jnp.float32),
        grid=(bp // bb,),
        in_specs=[
            pl.BlockSpec((bb, d_in), lambda i: (i, 0)),          # src features
            pl.BlockSpec((bb, n, d_in), lambda i: (i, 0, 0)),    # neighbor features
            pl.BlockSpec((bb, n), lambda i: (i, 0)),             # neighbor values
            pl.BlockSpec((2 * d_in, 2 * d_out), const),          # blockdiag GCN w
            pl.BlockSpec((2 * d_out, hidden), const),            # lin1 w (main)
            pl.BlockSpec((1, hidden), const),                    # lin1 w (vals row)
            pl.BlockSpec((1, hidden), const),                    # lin1 bias
            pl.BlockSpec((hidden, out_sz), const),               # lin2 w
            pl.BlockSpec((1, out_sz), const),                    # lin2 bias
        ],
        out_specs=pl.BlockSpec((bb, out_sz), lambda i: (i, 0)),
        compiler_params=pltpu.CompilerParams(
            dimension_semantics=("parallel",)),
    )(src2d, nbr3d, vals2d, w_bd, w1ab, w1c, b1_2d, w2t_c, b2_2d)

    out = out[:b]
    return out[0] if squeeze else out


def reference_forward_single(src, nbr, vals, params):
    """Pure-JAX single-node reference mirroring the PyTorch module exactly."""
    aggr = jnp.mean(nbr, axis=0)                       # (D_in,)
    neighbor_hidden = aggr @ params["w_agg"]           # (D_out,)
    self_hidden = src @ params["w_self"]               # (D_out,)
    hidden = jnp.concatenate(
        [self_hidden, neighbor_hidden, jnp.mean(vals)[None]], axis=0)
    hidden = jax.nn.relu(hidden)                       # SageGCN activation
    h1 = jax.nn.relu(hidden @ params["w1t"] + params["b1"])
    out = h1 @ params["w2t"] + params["b2"]
    return jnp.exp(out)


def init_params(key, input_dim, output_dim, input_size, hidden_size, output_size):
    ks = jax.random.split(key, 4)

    def kaiming_u(k, shape):
        bound = jnp.sqrt(6.0 / shape[0])
        return jax.random.uniform(k, shape, jnp.float32, -bound, bound)

    def xavier_u(k, shape):
        bound = jnp.sqrt(6.0 / (shape[0] + shape[1]))
        return jax.random.uniform(k, shape, jnp.float32, -bound, bound)

    return {
        "w_agg": kaiming_u(ks[0], (input_dim, output_dim)),
        "w_self": kaiming_u(ks[1], (input_dim, output_dim)),
        "w1t": xavier_u(ks[2], (input_size, hidden_size)),   # lin1.weight.T
        "b1": jnp.zeros((hidden_size,), jnp.float32),
        "w2t": xavier_u(ks[3], (hidden_size, output_size)),  # lin2.weight.T
        "b2": jnp.zeros((output_size,), jnp.float32),
    }


if __name__ == "__main__":
    # Module-consistent small shapes:
    #   input_dim = 16, output_dim = 8, input_size = 2*output_dim + 1 = 17,
    #   hidden_size = 32, output_size = 8, N_neighbors = 8, batch = 512 nodes.
    input_dim, output_dim = 16, 8
    input_size, hidden_size, output_size = 2 * output_dim + 1, 32, 8
    n_neighbors = 8
    batch = 512

    key = jax.random.PRNGKey(0)
    k_p, k_src, k_nbr, k_val = jax.random.split(key, 4)

    params = init_params(k_p, input_dim, output_dim,
                         input_size, hidden_size, output_size)

    src = jax.random.normal(k_src, (batch, input_dim), jnp.float32)
    nbr = jax.random.normal(k_nbr, (batch, n_neighbors, input_dim), jnp.float32)
    vals = jax.random.normal(k_val, (batch, n_neighbors), jnp.float32)

    ref = jax.vmap(
        lambda s, nb, v: reference_forward_single(s, nb, v, params))(src, nbr, vals)
    ref = jax.block_until_ready(ref)

    # Batched f32 path (numerically tight).
    out = node_embed_forward(src, nbr, vals, params, block_b=128)
    out = jax.block_until_ready(out)
    assert out.shape == (batch, output_size)
    assert jnp.allclose(out, ref, rtol=1e-4, atol=1e-4), float(
        jnp.max(jnp.abs(out - ref)))

    # Original single-node signature (module's forward semantics; pads to 8 rows).
    out1 = node_embed_forward(src[0], nbr[0], vals[0], params)
    out1 = jax.block_until_ready(out1)
    assert out1.shape == (output_size,)
    assert jnp.allclose(out1, ref[0], rtol=1e-4, atol=1e-4)

    # bf16 matmul-operand path (v6e/v7x HBM-roofline option); loose tolerance.
    out_bf16 = node_embed_forward(src, nbr, vals, params, block_b=128,
                                  compute_dtype=jnp.bfloat16)
    out_bf16 = jax.block_until_ready(out_bf16)
    assert jnp.allclose(out_bf16, ref, rtol=0.15, atol=0.15)

    print("KERNEL_OK")
</pallas_src>

<mosaic_0001>
module attributes {stable_mosaic.version = 11 : i64} {
  func.func @node_embed_kernel(%arg0: i32, %arg1: memref<128x16xf32, #tpu.memory_space<vmem>>, %arg2: memref<128x8x16xf32, #tpu.memory_space<vmem>>, %arg3: memref<128x8xf32, #tpu.memory_space<vmem>>, %arg4: memref<32x16xf32, #tpu.memory_space<vmem>>, %arg5: memref<16x32xf32, #tpu.memory_space<vmem>>, %arg6: memref<1x32xf32, #tpu.memory_space<vmem>>, %arg7: memref<1x32xf32, #tpu.memory_space<vmem>>, %arg8: memref<32x8xf32, #tpu.memory_space<vmem>>, %arg9: memref<1x8xf32, #tpu.memory_space<vmem>>, %arg10: memref<128x8xf32, #tpu.memory_space<vmem>>) attributes {dimension_semantics = [#tpu.dimension_semantics<parallel>], iteration_bounds = array<i64: 4>, scalar_prefetch = 0 : i64, scratch_operands = 0 : i64, tpu.core_type = #tpu.core_type<tc>, window_params = [{transform_indices = @transform_0, window_bounds = array<i64: 128, 16>}, {transform_indices = @transform_1, window_bounds = array<i64: 128, 8, 16>}, {transform_indices = @transform_2, window_bounds = array<i64: 128, 8>}, {pipeline_mode = #tpu.pipeline_mode<synchronous>, transform_indices = @transform_3, window_bounds = array<i64: 32, 16>}, {pipeline_mode = #tpu.pipeline_mode<synchronous>, transform_indices = @transform_4, window_bounds = array<i64: 16, 32>}, {pipeline_mode = #tpu.pipeline_mode<synchronous>, transform_indices = @transform_5, window_bounds = array<i64: 1, 32>}, {pipeline_mode = #tpu.pipeline_mode<synchronous>, transform_indices = @transform_6, window_bounds = array<i64: 1, 32>}, {pipeline_mode = #tpu.pipeline_mode<synchronous>, transform_indices = @transform_7, window_bounds = array<i64: 32, 8>}, {pipeline_mode = #tpu.pipeline_mode<synchronous>, transform_indices = @transform_8, window_bounds = array<i64: 1, 8>}, {transform_indices = @transform_9, window_bounds = array<i64: 128, 8>}]} {
    %c0 = arith.constant 0 : index
    %c0_0 = arith.constant 0 : index
    %c0_1 = arith.constant 0 : index
    %0 = vector.load %arg2[%c0, %c0_0, %c0_1] : memref<128x8x16xf32, #tpu.memory_space<vmem>>, vector<128x8x16xf32>
    %cst = arith.constant dense<0.000000e+00> : vector<128x16xf32>
    %1 = vector.multi_reduction <add>, %0, %cst [1] : vector<128x8x16xf32> to vector<128x16xf32>
    %cst_2 = arith.constant 8.000000e+00 : f32
    %2 = vector.broadcast %cst_2 : f32 to vector<128x16xf32>
    %3 = arith.divf %1, %2 : vector<128x16xf32>
    %c0_3 = arith.constant 0 : index
    %c0_4 = arith.constant 0 : index
    %4 = vector.load %arg1[%c0_3, %c0_4] : memref<128x16xf32, #tpu.memory_space<vmem>>, vector<128x16xf32>
    %c0_5 = arith.constant 0 : index
    %c0_6 = arith.constant 0 : index
    %5 = vector.load %arg4[%c0_5, %c0_6] : memref<32x16xf32, #tpu.memory_space<vmem>>, vector<32x16xf32>
    %6 = tpu.concatenate %4, %3 in 1 : vector<128x16xf32>, vector<128x16xf32> -> vector<128x32xf32>
    %cst_7 = arith.constant dense<0.000000e+00> : vector<128x16xf32>
    %7 = tpu.matmul %6, %5, %cst_7 {dimension_numbers = #tpu.dot_dimension_numbers<[1], [0], [0], [1], [0, 0, 1, 1], [], []>} : vector<128x32xf32>, vector<32x16xf32>, vector<128x16xf32> -> vector<128x16xf32>
    %cst_8 = arith.constant 0.000000e+00 : f32
    %8 = vector.broadcast %cst_8 : f32 to vector<128x16xf32>
    %9 = arith.maximumf %7, %8 : vector<128x16xf32>
    %c0_9 = arith.constant 0 : index
    %c0_10 = arith.constant 0 : index
    %10 = vector.load %arg3[%c0_9, %c0_10] : memref<128x8xf32, #tpu.memory_space<vmem>>, vector<128x8xf32>
    %cst_11 = arith.constant dense<0.000000e+00> : vector<128xf32>
    %11 = vector.multi_reduction <add>, %10, %cst_11 [1] : vector<128x8xf32> to vector<128xf32>
    %12 = vector.shape_cast %11 : vector<128xf32> to vector<128x1xf32>
    %cst_12 = arith.constant 8.000000e+00 : f32
    %13 = vector.broadcast %cst_12 : f32 to vector<128x1xf32>
    %14 = arith.divf %12, %13 : vector<128x1xf32>
    %cst_13 = arith.constant 0.000000e+00 : f32
    %15 = vector.broadcast %cst_13 : f32 to vector<128x1xf32>
    %16 = arith.maximumf %14, %15 : vector<128x1xf32>
    %c0_14 = arith.constant 0 : index
    %c0_15 = arith.constant 0 : index
    %17 = vector.load %arg5[%c0_14, %c0_15] : memref<16x32xf32, #tpu.memory_space<vmem>>, vector<16x32xf32>
    %cst_16 = arith.constant dense<0.000000e+00> : vector<128x32xf32>
    %18 = tpu.matmul %9, %17, %cst_16 {dimension_numbers = #tpu.dot_dimension_numbers<[1], [0], [0], [1], [0, 0, 1, 1], [], []>} : vector<128x16xf32>, vector<16x32xf32>, vector<128x32xf32> -> vector<128x32xf32>
    %c0_17 = arith.constant 0 : index
    %c0_18 = arith.constant 0 : index
    %19 = vector.load %arg6[%c0_17, %c0_18] : memref<1x32xf32, #tpu.memory_space<vmem>>, vector<1x32xf32>
    %20 = vector.broadcast %16 : vector<128x1xf32> to vector<128x32xf32>
    %21 = vector.broadcast %19 : vector<1x32xf32> to vector<128x32xf32>
    %22 = arith.mulf %20, %21 : vector<128x32xf32>
    %23 = arith.addf %18, %22 : vector<128x32xf32>
    %c0_19 = arith.constant 0 : index
    %c0_20 = arith.constant 0 : index
    %24 = vector.load %arg7[%c0_19, %c0_20] : memref<1x32xf32, #tpu.memory_space<vmem>>, vector<1x32xf32>
    %25 = vector.broadcast %24 : vector<1x32xf32> to vector<128x32xf32>
    %26 = arith.addf %23, %25 : vector<128x32xf32>
    %cst_21 = arith.constant 0.000000e+00 : f32
    %27 = vector.broadcast %cst_21 : f32 to vector<128x32xf32>
    %28 = arith.maximumf %26, %27 : vector<128x32xf32>
    %c0_22 = arith.constant 0 : index
    %c0_23 = arith.constant 0 : index
    %29 = vector.load %arg8[%c0_22, %c0_23] : memref<32x8xf32, #tpu.memory_space<vmem>>, vector<32x8xf32>
    %cst_24 = arith.constant dense<0.000000e+00> : vector<128x8xf32>
    %30 = tpu.matmul %28, %29, %cst_24 {dimension_numbers = #tpu.dot_dimension_numbers<[1], [0], [0], [1], [0, 0, 1, 1], [], []>} : vector<128x32xf32>, vector<32x8xf32>, vector<128x8xf32> -> vector<128x8xf32>
    %c0_25 = arith.constant 0 : index
    %c0_26 = arith.constant 0 : index
    %31 = vector.load %arg9[%c0_25, %c0_26] : memref<1x8xf32, #tpu.memory_space<vmem>>, vector<1x8xf32>
    %32 = vector.broadcast %31 : vector<1x8xf32> to vector<128x8xf32>
    %33 = arith.addf %30, %32 : vector<128x8xf32>
    %34 = math.exp %33 : vector<128x8xf32>
    %c0_27 = arith.constant 0 : index
    %c0_28 = arith.constant 0 : index
    %35 = vector.load %arg10[%c0_27, %c0_28] : memref<128x8xf32, #tpu.memory_space<vmem>>, vector<128x8xf32>
    tpu.vector_store %arg10[%c0_27, %c0_28], %34 {strides = array<i32>} : memref<128x8xf32, #tpu.memory_space<vmem>>, vector<128x8xf32>,
    return
  }
  func.func @transform_0(%arg0: i32) -> (i32, i32) {
    %c0_i32 = arith.constant 0 : i32
    %c0_i32_0 = arith.constant 0 : i32
    return %arg0, %c0_i32 : i32, i32
  }
  func.func @transform_1(%arg0: i32) -> (i32, i32, i32) {
    %c0_i32 = arith.constant 0 : i32
    %c0_i32_0 = arith.constant 0 : i32
    %c0_i32_1 = arith.constant 0 : i32
    return %arg0, %c0_i32, %c0_i32_0 : i32, i32, i32
  }
  func.func @transform_2(%arg0: i32) -> (i32, i32) {
    %c0_i32 = arith.constant 0 : i32
    %c0_i32_0 = arith.constant 0 : i32
    return %arg0, %c0_i32 : i32, i32
  }
  func.func @transform_3(%arg0: i32) -> (i32, i32) {
    %c0_i32 = arith.constant 0 : i32
    %c0_i32_0 = arith.constant 0 : i32
    %c0_i32_1 = arith.constant 0 : i32
    return %c0_i32, %c0_i32_0 : i32, i32
  }
  func.func @transform_4(%arg0: i32) -> (i32, i32) {
    %c0_i32 = arith.constant 0 : i32
    %c0_i32_0 = arith.constant 0 : i32
    %c0_i32_1 = arith.constant 0 : i32
    return %c0_i32, %c0_i32_0 : i32, i32
  }
  func.func @transform_5(%arg0: i32) -> (i32, i32) {
    %c0_i32 = arith.constant 0 : i32
    %c0_i32_0 = arith.constant 0 : i32
    %c0_i32_1 = arith.constant 0 : i32
    return %c0_i32, %c0_i32_0 : i32, i32
  }
  func.func @transform_6(%arg0: i32) -> (i32, i32) {
    %c0_i32 = arith.constant 0 : i32
    %c0_i32_0 = arith.constant 0 : i32
    %c0_i32_1 = arith.constant 0 : i32
    return %c0_i32, %c0_i32_0 : i32, i32
  }
  func.func @transform_7(%arg0: i32) -> (i32, i32) {
    %c0_i32 = arith.constant 0 : i32
    %c0_i32_0 = arith.constant 0 : i32
    %c0_i32_1 = arith.constant 0 : i32
    return %c0_i32, %c0_i32_0 : i32, i32
  }
  func.func @transform_8(%arg0: i32) -> (i32, i32) {
    %c0_i32 = arith.constant 0 : i32
    %c0_i32_0 = arith.constant 0 : i32
    %c0_i32_1 = arith.constant 0 : i32
    return %c0_i32, %c0_i32_0 : i32, i32
  }
  func.func @transform_9(%arg0: i32) -> (i32, i32) {
    %c0_i32 = arith.constant 0 : i32
    %c0_i32_0 = arith.constant 0 : i32
    return %arg0, %c0_i32 : i32, i32
  }
}

</mosaic_0001>

<bundles_post_ra>
// kernel: tpu_custom_call.1
= control target key start
LH: loop header
LB: loop body
LE: loop exit
PB: predicated region body
PF: predicated region fallthrough
CT: control target
= control target key end

     0   :  { %s2698_s30 = smov 0   ;;  %s3520_s0 = inlined_call_operand.vmem [shape: f32[512,16], index: 0, kind: input, shape index: {}]   ;;  %s3521_s1 = inlined_call_operand.vmem [shape: f32[512,8,16], index: 1, kind: input, shape index: {}]   ;;  %s3522_s2 = inlined_call_operand.vmem [shape: f32[512,8], index: 2, kind: input, shape index: {}]   ;;  %s3523_s3 = inlined_call_operand.vmem [shape: f32[32,16], index: 3, kind: input, shape index: {}]   ;;  %s3524_s4 = inlined_call_operand.vmem [shape: f32[16,32], index: 4, kind: input, shape index: {}]   ;;  %s3525_s5 = inlined_call_operand.vmem [shape: f32[1,32], index: 5, kind: input, shape index: {}]   ;;  %s3526_s6 = inlined_call_operand.vmem [shape: f32[1,32], index: 6, kind: input, shape index: {}]   ;;  %s3527_s7 = inlined_call_operand.vmem [shape: f32[32,8], index: 7, kind: input, shape index: {}]   ;;  %s3528_s8 = inlined_call_operand.vmem [shape: f32[1,8], index: 8, kind: input, shape index: {}]   ;;  %s3529_s9 = inlined_call_operand.vmem [shape: f32[512,8], index: 9, kind: output, shape index: {}]  }
   0x1 LB: > { %s2518_s10 = sadd.s32 4294967295, %s2644_s30   ;;  %p2522_p0 = scmp.ge.s32.totalorder %s2644_s30, 1  ;;  %s2644_s30 = sphi %s2698_s30, %s19_s30  }
   0x2   : > { %p310_p1 = scmp.lt.s32.totalorder %s2644_s30, 5 }
   0x4   : > { %p311_p2 = pnand %p2522_p0, %p310_p1 }
   0x5   : > { %s2525_s11 = sshll.u32 (!%p311_p2), %s2518_s10, 7  ;;  %s2647_s16 = smov (!%p311_p2), 16  }
   0x6   : > { %314 = sbr.rel (%p311_p2) target bundleno = 822 (0x336), region = 56  ;;  %p363_p3 = scmp.lt.s32.totalorder (!%p311_p2), %s2525_s11, 511 }
   0x7   : > { %s3160_s17 = sshll.u32 (!%p311_p2), %s2518_s10, 4 }
   0x8   : > { %p357_p4 = scmp.lt.s32.totalorder (!%p311_p2), %s3160_s17, 63 }
   0xb   : > { %s3531_s11 = smov (!%p363_p3, %s2525_s11), 511  ;;  %vm508_vm0 = vcmask 130048   ;;  %v2646_v9 = vmov 8.0   ;;  %vm1688_vm2 = vcmask 1041409   ;;  %vm1690_vm3 = vcmask 1042434   ;;  %s3533_s17 = smov (!%p357_p4, %s3160_s17), 63 }
   0xc   : > { %s2526_s12 = sshll.u32 %s3531_s11, 3  ;;  %2604 = vrcp.f32 %v2646_v9  ;;  %vm1692_vm4 = vcmask 1043459   ;;  %vm1694_vm5 = vcmask 1044484   ;;  %vm1696_vm6 = vcmask 1045509   ;;  %s3195_s26 = sshll.u32 %s3533_s17, 3 }
   0xd   : > { %s2711_s15 = scalar_lea.vmem %s3521_s1, %s2526_s12  ;;  %vm1698_vm7 = vcmask 1046534   ;;  %vm1700_vm8 = vcmask 1047559   ;;  %s3208_s29 = scalar_lea.vmem %s3520_s0, %s3195_s26  ;;  %vm1871_vm9 = vcmask 261120   ;;  %vm2017_vm10 = vcmask 64512  }
   0xe   : > { %v380_v0 = vld [vmem:[%s2711_s15] sm:$0xff]  ;;  %v381_v1 = vld [vmem:[%s2711_s15 + $0x8] sm:$0xff]  ;;  %v382_v2 = vld [vmem:[%s2711_s15 + $0x10] sm:$0xff]  ;;  %s3308_s12 = scalar_lea.vmem %s3522_s2, %s3195_s26  ;;  %s3467_s14 = scalar_lea.vmem %s3529_s9, %s3195_s26 }
   0xf   : > { %v383_v3 = vld [vmem:[%s2711_s15 + $0x18] sm:$0xff]  ;;  %v384_v4 = vld [vmem:[%s2711_s15 + $0x20] sm:$0xff]  ;;  %v385_v5 = vld [vmem:[%s2711_s15 + $0x28] sm:$0xff]  ;;  %v509_v6 = vsel %vm508_vm0, %v380_v0, 0.0  ;;  %v516_v7 = vsel %vm508_vm0, %v381_v1, 0.0  ;;  %v523_v8 = vsel %vm508_vm0, %v382_v2, 0.0 }
  0x10   : > { %v386_v10 = vld [vmem:[%s2711_s15 + $0x30] sm:$0xff]  ;;  %v387_v11 = vld [vmem:[%s2711_s15 + $0x38] sm:$0xff]  ;;  %v510_v12 = vrot.slane %v509_v6, 4  ;;  %v517_v13 = vrot.slane %v516_v7, 4  ;;  %v524_v14 = vrot.slane %v523_v8, 4  ;;  %v530_v15 = vsel %vm508_vm0, %v383_v3, 0.0 }
  0x11   : > { %v531_v16 = vrot.slane %v530_v15, 4  ;;  %v537_v17 = vsel %vm508_vm0, %v384_v4, 0.0  ;;  %v544_v18 = vsel %vm508_vm0, %v385_v5, 0.0  ;;  %v551_v19 = vsel %vm508_vm0, %v386_v10, 0.0  ;;  %v388_v53 = vld [vmem:[%s2711_s15 + $0x40] sm:$0xff]  ;;  %v389_v54 = vld [vmem:[%s2711_s15 + $0x48] sm:$0xff] }
  0x12   : > { %v511_v20 = vadd.f32 %v510_v12, %v509_v6  ;;  %v518_v21 = vadd.f32 %v517_v13, %v516_v7  ;;  %v525_v22 = vadd.f32 %v524_v14, %v523_v8  ;;  %v538_v23 = vrot.slane %v537_v17, 4  ;;  %v2729_v32 = vpop.eup %2604  ;;  %v390_v63 = vld [vmem:[%s2711_s15 + $0x50] sm:$0xff]  ;;  %v391_v0 = vld [vmem:[%s2711_s15 + $0x58] sm:$0xff]  ;;  %v392_v8 = vld [vmem:[%s2711_s15 + $0x60] sm:$0xff] }
  0x13   : > { %v532_v24 = vadd.f32 %v531_v16, %v530_v15  ;;  %v545_v25 = vrot.slane %v544_v18, 4  ;;  %v552_v26 = vrot.slane %v551_v19, 4  ;;  %v558_v27 = vsel %vm508_vm0, %v387_v11, 0.0  ;;  %v393_v9 = vld [vmem:[%s2711_s15 + $0x68] sm:$0xff]  ;;  %v394_v16 = vld [vmem:[%s2711_s15 + $0x70] sm:$0xff] }
  0x14   : > { %v512_v28 = vrot.slane %v511_v20, 2  ;;  %v519_v29 = vrot.slane %v518_v21, 2  ;;  %v526_v30 = vrot.slane %v525_v22, 2  ;;  %v539_v31 = vadd.f32 %v538_v23, %v537_v17 }
  0x15   : > { %v533_v33 = vrot.slane %v532_v24, 2  ;;  %v546_v34 = vadd.f32 %v545_v25, %v544_v18  ;;  %v553_v35 = vadd.f32 %v552_v26, %v551_v19  ;;  %v559_v36 = vrot.slane %v558_v27, 4 }
  0x16   : > { %v513_v37 = vadd.f32 %v512_v28, %v511_v20  ;;  %v520_v38 = vadd.f32 %v519_v29, %v518_v21  ;;  %v527_v39 = vadd.f32 %v526_v30, %v525_v22  ;;  %v540_v40 = vrot.slane %v539_v31, 2 }
  0x17   : > { %v534_v41 = vadd.f32 %v533_v33, %v532_v24  ;;  %v547_v42 = vrot.slane %v546_v34, 2  ;;  %v554_v43 = vrot.slane %v553_v35, 2  ;;  %v560_v44 = vadd.f32 %v559_v36, %v558_v27 }
  0x18   : > { %v514_v45 = vrot.slane %v513_v37, 1  ;;  %v521_v46 = vrot.slane %v520_v38, 1  ;;  %v528_v47 = vrot.slane %v527_v39, 1  ;;  %v541_v48 = vadd.f32 %v540_v40, %v539_v31 }
  0x19   : > { %v535_v49 = vrot.slane %v534_v41, 1  ;;  %v548_v50 = vadd.f32 %v547_v42, %v546_v34  ;;  %v555_v51 = vadd.f32 %v554_v43, %v553_v35  ;;  %v561_v52 = vrot.slane %v560_v44, 2 }
  0x1a   : > { %vm1410_vm1 = vweird.f32 %v2729_v32  ;;  %v515_v55 = vadd.f32 %v514_v45, %v513_v37  ;;  %v522_v56 = vadd.f32 %v521_v46, %v520_v38  ;;  %v529_v57 = vadd.f32 %v528_v47, %v527_v39 }
  0x1b   : > { %v542_v58 = vrot.slane %v541_v48, 1  ;;  %v536_v59 = vadd.f32 %v535_v49, %v534_v41  ;;  %v549_v60 = vrot.slane %v548_v50, 1  ;;  %v556_v61 = vrot.slane %v555_v51, 1 }
  0x1c   : > { %v562_v62 = vadd.f32 %v561_v52, %v560_v44  ;;  %v1406_v2 = vmul.f32 8.0, %v2729_v32  ;;  %v565_v3 = vsel %vm508_vm0, %v388_v53, 0.0  ;;  %v572_v4 = vsel %vm508_vm0, %v389_v54, 0.0  ;;  %v395_v53 = vld [vmem:[%s2711_s15 + $0x78] sm:$0xff] }
  0x1d   : > { %v543_v1 = vadd.f32 %v542_v58, %v541_v48  ;;  %v550_v5 = vadd.f32 %v549_v60, %v548_v50  ;;  %v557_v6 = vadd.f32 %v556_v61, %v555_v51  ;;  %v566_v10 = vrot.slane %v565_v3, 4 }
  0x1e   : > { %v563_v7 = vrot.slane %v562_v62, 1  ;;  %v1407_v11 = vsub.f32 1.0, %v1406_v2  ;;  %v573_v12 = vrot.slane %v572_v4, 4  ;;  %v579_v13 = vsel %vm508_vm0, %v390_v63, 0.0 }
  0x1f   : > { %v586_v14 = vsel %vm508_vm0, %v391_v0, 0.0  ;;  %v567_v17 = vadd.f32 %v566_v10, %v565_v3  ;;  %v580_v18 = vrot.slane %v579_v13, 4  ;;  %v593_v22 = vsel %vm508_vm0, %v392_v8, 0.0 }
  0x20   : > { %v564_v15 = vadd.f32 %v563_v7, %v562_v62  ;;  %v587_v19 = vrot.slane %v586_v14, 4  ;;  %v1408_v20 = vmul.f32 %v2729_v32, %v1407_v11  ;;  %v574_v21 = vadd.f32 %v573_v12, %v572_v4 }
  0x21   : > { %v600_v23 = vsel %vm508_vm0, %v393_v9, 0.0  ;;  %v568_v24 = vrot.slane %v567_v17, 2  ;;  %v581_v25 = vadd.f32 %v580_v18, %v579_v13  ;;  %v594_v27 = vrot.slane %v593_v22, 4  ;;  %v396_v9 = vld [vmem:[%s2711_s15 + $0x80] sm:$0xff]  ;;  %v397_v18 = vld [vmem:[%s2711_s15 + $0x88] sm:$0xff] }
  0x22   : > { %v588_v26 = vadd.f32 %v587_v19, %v586_v14  ;;  %v1409_v28 = vadd.f32 %v2729_v32, %v1408_v20  ;;  %v575_v29 = vrot.slane %v574_v21, 2  ;;  %v601_v30 = vrot.slane %v600_v23, 4 }
  0x23   : > { %v607_v31 = vsel %vm508_vm0, %v394_v16, 0.0  ;;  %v569_v33 = vadd.f32 %v568_v24, %v567_v17  ;;  %v582_v34 = vrot.slane %v581_v25, 2  ;;  %v595_v36 = vadd.f32 %v594_v27, %v593_v22  ;;  %v398_v22 = vld [vmem:[%s2711_s15 + $0x90] sm:$0xff] }
  0x24   : > { %v589_v35 = vrot.slane %v588_v26, 2  ;;  %v2752_v37 = vsel %vm1410_vm1, %v2729_v32, %v1409_v28  ;;  %v576_v38 = vadd.f32 %v575_v29, %v574_v21  ;;  %v602_v39 = vadd.f32 %v601_v30, %v600_v23 }
  0x25   : > { %v608_v40 = vrot.slane %v607_v31, 4  ;;  %v1412_v41 = vmul.f32 %v2752_v37, %v515_v55  ;;  %v1413_v42 = vmul.f32 %v2752_v37, %v522_v56  ;;  %v1414_v43 = vmul.f32 %v2752_v37, %v529_v57 }
  0x26   : > { %v1415_v44 = vmul.f32 %v2752_v37, %v536_v59  ;;  %v1416_v45 = vmul.f32 %v2752_v37, %v543_v1  ;;  %v1417_v46 = vmul.f32 %v2752_v37, %v550_v5  ;;  %v1418_v47 = vmul.f32 %v2752_v37, %v557_v6 }
  0x27   : > { %v1419_v32 = vmul.f32 %v2752_v37, %v564_v15  ;;  %v1689_v48 = vsel %vm1688_vm2, %v1413_v42, %v1412_v41  ;;  %v570_v49 = vrot.slane %v569_v33, 1  ;;  %v577_v50 = vrot.slane %v576_v38, 1  ;;  %v400_v42 = vld [vmem:[%s2711_s15 + $0xa0] sm:$0xff] }
  0x28   : > { %v583_v51 = vadd.f32 %v582_v34, %v581_v25  ;;  %v1691_v52 = vsel %vm1690_vm3, %v1414_v43, %v1689_v48  ;;  %v590_v54 = vadd.f32 %v589_v35, %v588_v26  ;;  %v596_v55 = vrot.slane %v595_v36, 2  ;;  %v401_v43 = vld [vmem:[%s2711_s15 + $0xa8] sm:$0xff] }
  0x29   : > { %v603_v56 = vrot.slane %v602_v39, 2  ;;  %v1693_v57 = vsel %vm1692_vm4, %v1415_v44, %v1691_v52  ;;  %v571_v58 = vadd.f32 %v570_v49, %v569_v33  ;;  %v578_v59 = vadd.f32 %v577_v50, %v576_v38  ;;  %v402_v52 = vld [vmem:[%s2711_s15 + $0xb0] sm:$0xff] }
  0x2a   : > { %v584_v60 = vrot.slane %v583_v51, 1  ;;  %v1695_v61 = vsel %vm1694_vm5, %v1416_v45, %v1693_v57  ;;  %v591_v62 = vrot.slane %v590_v54, 1  ;;  %v597_v63 = vadd.f32 %v596_v55, %v595_v36 }
  0x2b   : > { %v604_v0 = vadd.f32 %v603_v56, %v602_v39  ;;  %v1697_v1 = vsel %vm1696_vm6, %v1417_v46, %v1695_v61  ;;  %v609_v3 = vadd.f32 %v608_v40, %v607_v31  ;;  %v614_v4 = vsel %vm508_vm0, %v395_v53, 0.0  ;;  %v399_v31 = vld [vmem:[%s2711_s15 + $0x98] sm:$0xff] }
  0x2c   : > { %v585_v2 = vadd.f32 %v584_v60, %v583_v51  ;;  %v1699_v5 = vsel %vm1698_vm7, %v1418_v47, %v1697_v1  ;;  %v592_v6 = vadd.f32 %v591_v62, %v590_v54  ;;  %v598_v7 = vrot.slane %v597_v63, 1 }
  0x2d   : > { %v605_v8 = vrot.slane %v604_v0, 1  ;;  %v1701_v10 = vsel %vm1700_vm8, %v1419_v32, %v1699_v5  ;;  %v610_v11 = vrot.slane %v609_v3, 2  ;;  %v615_v12 = vrot.slane %v614_v4, 4 }
  0x2e   : > { %v1420_v13 = vmul.f32 %v2752_v37, %v571_v58  ;;  %1807 = vrot.lane.b32.xlu0 %v1701_v10, %s2647_s16  ;;  %v599_v14 = vadd.f32 %v598_v7, %v597_v63  ;;  %v1421_v16 = vmul.f32 %v2752_v37, %v578_v59  ;;  %v1422_v17 = vmul.f32 %v2752_v37, %v585_v2  ;;  %v403_v2 = vld [vmem:[%s2711_s15 + $0xb8] sm:$0xff] }
  0x2f   : > { %v606_v15 = vadd.f32 %v605_v8, %v604_v0  ;;  %v611_v19 = vadd.f32 %v610_v11, %v609_v3  ;;  %v616_v20 = vadd.f32 %v615_v12, %v614_v4  ;;  %v1423_v21 = vmul.f32 %v2752_v37, %v592_v6 }
  0x30   : > { %v621_v23 = vsel %vm508_vm0, %v396_v9, 0.0  ;;  %v1424_v24 = vmul.f32 %v2752_v37, %v599_v14  ;;  %v1702_v26 = vsel %vm1688_vm2, %v1421_v16, %v1420_v13  ;;  %v628_v33 = vsel %vm508_vm0, %v397_v18, 0.0 }
  0x31   : > { %v1425_v25 = vmul.f32 %v2752_v37, %v606_v15  ;;  %v622_v27 = vrot.slane %v621_v23, 4  ;;  %v612_v28 = vrot.slane %v611_v19, 1  ;;  %v617_v29 = vrot.slane %v616_v20, 2 }
  0x32   : > { %v1703_v30 = vsel %vm1690_vm3, %v1422_v17, %v1702_v26  ;;  %v629_v36 = vrot.slane %v628_v33, 4  ;;  %v635_v38 = vsel %vm508_vm0, %v398_v22, 0.0  ;;  %v642_v32 = vsel %vm508_vm0, %v399_v31, 0.0  ;;  %v404_v22 = vld [vmem:[%s2711_s15 + $0xc0] sm:$0xff]  ;;  %v405_v31 = vld [vmem:[%s2711_s15 + $0xc8] sm:$0xff] }
  0x33   : > { %v1704_v34 = vsel %vm1692_vm4, %v1423_v21, %v1703_v30  ;;  %v623_v35 = vadd.f32 %v622_v27, %v621_v23  ;;  %v613_v39 = vadd.f32 %v612_v28, %v611_v19  ;;  %v618_v40 = vadd.f32 %v617_v29, %v616_v20 }
  0x34   : > { %v1705_v41 = vsel %vm1694_vm5, %v1424_v24, %v1704_v34  ;;  %v636_v44 = vrot.slane %v635_v38, 4  ;;  %v630_v47 = vadd.f32 %v629_v36, %v628_v33  ;;  %v643_v51 = vrot.slane %v642_v32, 4 }
  0x35   : > { %v1706_v45 = vsel %vm1696_vm6, %v1425_v25, %v1705_v41  ;;  %v624_v46 = vrot.slane %v623_v35, 2  ;;  %v619_v48 = vrot.slane %v618_v40, 1  ;;  %v1426_v49 = vmul.f32 %v2752_v37, %v613_v39 }
  0x36   : > { %v637_v50 = vadd.f32 %v636_v44, %v635_v38  ;;  %v631_v54 = vrot.slane %v630_v47, 2  ;;  %v649_v55 = vsel %vm508_vm0, %v400_v42, 0.0  ;;  %v656_v56 = vsel %vm508_vm0, %v401_v43, 0.0  ;;  %v406_v42 = vld [vmem:[%s2711_s15 + $0xd0] sm:$0xff] }
  0x37   : > { %v625_v53 = vadd.f32 %v624_v46, %v623_v35  ;;  %v620_v57 = vadd.f32 %v619_v48, %v618_v40  ;;  %v1707_v58 = vsel %vm1698_vm7, %v1426_v49, %v1706_v45  ;;  %v644_v60 = vadd.f32 %v643_v51, %v642_v32  ;;  %v407_v49 = vld [vmem:[%s2711_s15 + $0xd8] sm:$0xff] }
  0x38   : > { %v638_v59 = vrot.slane %v637_v50, 2  ;;  %v632_v62 = vadd.f32 %v631_v54, %v630_v47  ;;  %v650_v63 = vrot.slane %v649_v55, 4  ;;  %v657_v0 = vrot.slane %v656_v56, 4 }
  0x39   : > { %v626_v61 = vrot.slane %v625_v53, 1  ;;  %v1427_v1 = vmul.f32 %v2752_v37, %v620_v57  ;;  %v645_v4 = vrot.slane %v644_v60, 2  ;;  %v663_v5 = vsel %vm508_vm0, %v402_v52, 0.0 }
  0x3a   : > { %v639_v3 = vadd.f32 %v638_v59, %v637_v50  ;;  %v633_v7 = vrot.slane %v632_v62, 1  ;;  %v651_v8 = vadd.f32 %v650_v63, %v649_v55  ;;  %v658_v9 = vadd.f32 %v657_v0, %v656_v56  ;;  %v408_v50 = vld [vmem:[%s2711_s15 + $0xe0] sm:$0xff] }
  0x3b   : > { %v627_v6 = vadd.f32 %v626_v61, %v625_v53  ;;  %v1708_v10 = vsel %vm1700_vm8, %v1427_v1, %v1707_v58  ;;  %v646_v12 = vadd.f32 %v645_v4, %v644_v60  ;;  %v664_v13 = vrot.slane %v663_v5, 4  ;;  %v409_v61 = vld [vmem:[%s2711_s15 + $0xe8] sm:$0xff] }
  0x3c   : > { %v640_v11 = vrot.slane %v639_v3, 1  ;;  %1809 = vrot.lane.b32.xlu0 %v1708_v10, %s2647_s16  ;;  %v634_v14 = vadd.f32 %v633_v7, %v632_v62  ;;  %v652_v15 = vrot.slane %v651_v8, 2  ;;  %v659_v16 = vrot.slane %v658_v9, 2 }
  0x3d   : > { %v670_v17 = vsel %vm508_vm0, %v403_v2, 0.0  ;;  %v647_v19 = vrot.slane %v646_v12, 1  ;;  %v665_v20 = vadd.f32 %v664_v13, %v663_v5  ;;  %v1428_v25 = vmul.f32 %v2752_v37, %v627_v6  ;;  %v410_v5 = vld [vmem:[%s2711_s15 + $0xf0] sm:$0xff] }
  0x3e   : > { %v641_v18 = vadd.f32 %v640_v11, %v639_v3  ;;  %v671_v21 = vrot.slane %v670_v17, 4  ;;  %v653_v23 = vadd.f32 %v652_v15, %v651_v8  ;;  %v660_v24 = vadd.f32 %v659_v16, %v658_v9 }
  0x3f   : > { %v1429_v26 = vmul.f32 %v2752_v37, %v634_v14  ;;  %v648_v27 = vadd.f32 %v647_v19, %v646_v12  ;;  %v666_v28 = vrot.slane %v665_v20, 2  ;;  %v677_v36 = vsel %vm508_vm0, %v404_v22, 0.0  ;;  %v411_v14 = vld [vmem:[%s2711_s15 + $0xf8] sm:$0xff] }
  0x40   : > { %v672_v29 = vadd.f32 %v671_v21, %v670_v17  ;;  %v1430_v30 = vmul.f32 %v2752_v37, %v641_v18  ;;  %v654_v33 = vrot.slane %v653_v23, 1  ;;  %v661_v34 = vrot.slane %v660_v24, 1 }
  0x41   : > { %v1709_v35 = vsel %vm1688_vm2, %v1429_v26, %v1428_v25  ;;  %v667_v38 = vadd.f32 %v666_v28, %v665_v20  ;;  %v1431_v40 = vmul.f32 %v2752_v37, %v648_v27  ;;  %v678_v45 = vrot.slane %v677_v36, 4 }
  0x42   : > { %v673_v39 = vrot.slane %v672_v29, 2  ;;  %v1710_v41 = vsel %vm1690_vm3, %v1430_v30, %v1709_v35  ;;  %v655_v43 = vadd.f32 %v654_v33, %v653_v23  ;;  %v662_v44 = vadd.f32 %v661_v34, %v660_v24 }
  0x43   : > { %v684_v46 = vsel %vm508_vm0, %v405_v31, 0.0  ;;  %v668_v47 = vrot.slane %v667_v38, 1  ;;  %v1711_v48 = vsel %vm1692_vm4, %v1431_v40, %v1710_v41  ;;  %v679_v54 = vadd.f32 %v678_v45, %v677_v36  ;;  %v428_v36 = vld [vmem:[%s2711_s15 + $0x180] sm:$0xff] }
  0x44   : > { %v674_v32 = vadd.f32 %v673_v39, %v672_v29  ;;  %v685_v51 = vrot.slane %v684_v46, 4  ;;  %v1432_v52 = vmul.f32 %v2752_v37, %v655_v43  ;;  %v1433_v53 = vmul.f32 %v2752_v37, %v662_v44 }
  0x45   : > { %v691_v55 = vsel %vm508_vm0, %v406_v42, 0.0  ;;  %v669_v56 = vadd.f32 %v668_v47, %v667_v38  ;;  %v680_v62 = vrot.slane %v679_v54, 2  ;;  %v698_v63 = vsel %vm508_vm0, %v407_v49, 0.0 }
  0x46   : > { %v675_v57 = vrot.slane %v674_v32, 1  ;;  %v686_v58 = vadd.f32 %v685_v51, %v684_v46  ;;  %v692_v59 = vrot.slane %v691_v55, 4  ;;  %v1712_v60 = vsel %vm1694_vm5, %v1432_v52, %v1711_v48  ;;  %v429_v46 = vld [vmem:[%s2711_s15 + $0x188] sm:$0xff] }
  0x47   : > { %v705_v0 = vsel %vm508_vm0, %v408_v50, 0.0  ;;  %v1434_v2 = vmul.f32 %v2752_v37, %v669_v56  ;;  %v1713_v3 = vsel %vm1696_vm6, %v1433_v53, %v1712_v60  ;;  %v681_v6 = vadd.f32 %v680_v62, %v679_v54  ;;  %v430_v56 = vld [vmem:[%s2711_s15 + $0x190] sm:$0xff] }
  0x48   : > { %v676_v1 = vadd.f32 %v675_v57, %v674_v32  ;;  %v687_v4 = vrot.slane %v686_v58, 2  ;;  %v693_v7 = vadd.f32 %v692_v59, %v691_v55  ;;  %v699_v8 = vrot.slane %v698_v63, 4  ;;  %v431_v57 = vld [vmem:[%s2711_s15 + $0x198] sm:$0xff] }
  0x49   : > { %v706_v9 = vrot.slane %v705_v0, 4  ;;  %v1714_v11 = vsel %vm1698_vm7, %v1434_v2, %v1713_v3  ;;  %v712_v13 = vsel %vm508_vm0, %v409_v61, 0.0  ;;  %v682_v15 = vrot.slane %v681_v6, 1 }
  0x4a   : > { %v1435_v10 = vmul.f32 %v2752_v37, %v676_v1  ;;  %v688_v12 = vadd.f32 %v687_v4, %v686_v58  ;;  %v694_v16 = vrot.slane %v693_v7, 2  ;;  %v700_v17 = vadd.f32 %v699_v8, %v698_v63 }
  0x4b   : > { %v707_v18 = vadd.f32 %v706_v9, %v705_v0  ;;  %v713_v21 = vrot.slane %v712_v13, 4  ;;  %v719_v22 = vsel %vm508_vm0, %v410_v5, 0.0  ;;  %v683_v23 = vadd.f32 %v682_v15, %v681_v6  ;;  %v432_v6 = vld [vmem:[%s2711_s15 + $0x1a0] sm:$0xff] }
  0x4c   : > { %v1715_v19 = vsel %vm1700_vm8, %v1435_v10, %v1714_v11  ;;  %v689_v20 = vrot.slane %v688_v12, 1  ;;  %v695_v24 = vadd.f32 %v694_v16, %v693_v7  ;;  %v701_v25 = vrot.slane %v700_v17, 2 }
  0x4d   : > { %1811 = vrot.lane.b32.xlu1 %v1715_v19, %s2647_s16  ;;  %v708_v26 = vrot.slane %v707_v18, 2  ;;  %v714_v28 = vadd.f32 %v713_v21, %v712_v13  ;;  %v720_v29 = vrot.slane %v719_v22, 4  ;;  %v726_v30 = vsel %vm508_vm0, %v411_v14, 0.0  ;;  %v433_v14 = vld [vmem:[%s2711_s15 + $0x1a8] sm:$0xff] }
  0x4e   : > { %v690_v27 = vadd.f32 %v689_v20, %v688_v12  ;;  %v696_v31 = vrot.slane %v695_v24, 1  ;;  %v702_v33 = vadd.f32 %v701_v25, %v700_v17  ;;  %v727_v35 = vrot.slane %v726_v30, 4 }
  0x4f   : > { %v709_v34 = vadd.f32 %v708_v26, %v707_v18  ;;  %v715_v38 = vrot.slane %v714_v28, 2  ;;  %v721_v39 = vadd.f32 %v720_v29, %v719_v22  ;;  %v1436_v40 = vmul.f32 %v2752_v37, %v683_v23  ;;  %v434_v23 = vld [vmem:[%s2711_s15 + $0x1b0] sm:$0xff] }
  0x50   : > { %v1437_v41 = vmul.f32 %v2752_v37, %v690_v27  ;;  %v697_v42 = vadd.f32 %v696_v31, %v695_v24  ;;  %v703_v43 = vrot.slane %v702_v33, 1  ;;  %v728_v45 = vadd.f32 %v727_v35, %v726_v30 }
  0x51   : > { %v710_v44 = vrot.slane %v709_v34, 1  ;;  %v716_v47 = vadd.f32 %v715_v38, %v714_v28  ;;  %v722_v32 = vrot.slane %v721_v39, 2  ;;  %v845_v49 = vsel %vm508_vm0, %v428_v36, 0.0 }
  0x52   : > { %v1716_v48 = vsel %vm1688_vm2, %v1437_v41, %v1436_v40  ;;  %v704_v50 = vadd.f32 %v703_v43, %v702_v33  ;;  %v729_v52 = vrot.slane %v728_v45, 2  ;;  %v1438_v53 = vmul.f32 %v2752_v37, %v697_v42  ;;  %v435_v33 = vld [vmem:[%s2711_s15 + $0x1b8] sm:$0xff] }
  0x53   : > { %v711_v51 = vadd.f32 %v710_v44, %v709_v34  ;;  %v717_v54 = vrot.slane %v716_v47, 1  ;;  %v723_v55 = vadd.f32 %v722_v32, %v721_v39  ;;  %v846_v58 = vrot.slane %v845_v49, 4 }
  0x54   : > { %v852_v59 = vsel %vm508_vm0, %v429_v46, 0.0  ;;  %v730_v60 = vadd.f32 %v729_v52, %v728_v45  ;;  %v1439_v61 = vmul.f32 %v2752_v37, %v704_v50  ;;  %v1717_v63 = vsel %vm1690_vm3, %v1438_v53, %v1716_v48  ;;  %v412_v46 = vld [vmem:[%s2711_s15 + $0x100] sm:$0xff] }
  0x55   : > { %v1440_v62 = vmul.f32 %v2752_v37, %v711_v51  ;;  %v718_v0 = vadd.f32 %v717_v54, %v716_v47  ;;  %v724_v1 = vrot.slane %v723_v55, 1  ;;  %v847_v2 = vadd.f32 %v846_v58, %v845_v49 }
  0x56   : > { %v853_v3 = vrot.slane %v852_v59, 4  ;;  %v731_v4 = vrot.slane %v730_v60, 1  ;;  %v1718_v5 = vsel %vm1692_vm4, %v1439_v61, %v1717_v63  ;;  %v859_v7 = vsel %vm508_vm0, %v430_v56, 0.0 }
  0x57   : > { %v866_v8 = vsel %vm508_vm0, %v431_v57, 0.0  ;;  %v725_v9 = vadd.f32 %v724_v1, %v723_v55  ;;  %v1441_v10 = vmul.f32 %v2752_v37, %v718_v0  ;;  %v1719_v11 = vsel %vm1694_vm5, %v1440_v62, %v1718_v5  ;;  %v413_v1 = vld [vmem:[%s2711_s15 + $0x108] sm:$0xff] }
  0x58   : > { %v848_v12 = vrot.slane %v847_v2, 2  ;;  %v732_v13 = vadd.f32 %v731_v4, %v730_v60  ;;  %v854_v15 = vadd.f32 %v853_v3, %v852_v59  ;;  %v860_v16 = vrot.slane %v859_v7, 4 }
  0x59   : > { %v867_v17 = vrot.slane %v866_v8, 4  ;;  %v1442_v18 = vmul.f32 %v2752_v37, %v725_v9  ;;  %v1720_v19 = vsel %vm1696_vm6, %v1441_v10, %v1719_v11  ;;  %v873_v21 = vsel %vm508_vm0, %v432_v6, 0.0 }
  0x5a   : > { %v849_v20 = vadd.f32 %v848_v12, %v847_v2  ;;  %v1443_v22 = vmul.f32 %v2752_v37, %v732_v13  ;;  %v855_v24 = vrot.slane %v854_v15, 2  ;;  %v861_v25 = vadd.f32 %v860_v16, %v859_v7  ;;  %v414_v2 = vld [vmem:[%s2711_s15 + $0x110] sm:$0xff] }
  0x5b   : > { %v868_v26 = vadd.f32 %v867_v17, %v866_v8  ;;  %v1721_v27 = vsel %vm1698_vm7, %v1442_v18, %v1720_v19  ;;  %v874_v29 = vrot.slane %v873_v21, 4  ;;  %v880_v30 = vsel %vm508_vm0, %v433_v14, 0.0  ;;  %v415_v14 = vld [vmem:[%s2711_s15 + $0x118] sm:$0xff] }
  0x5c   : > { %v850_v28 = vrot.slane %v849_v20, 1  ;;  %v1722_v31 = vsel %vm1700_vm8, %v1443_v22, %v1721_v27  ;;  %v856_v34 = vadd.f32 %v855_v24, %v854_v15  ;;  %v862_v35 = vrot.slane %v861_v25, 2  ;;  %v416_v22 = vld [vmem:[%s2711_s15 + $0x120] sm:$0xff] }
  0x5d   : > { %v869_v36 = vrot.slane %v868_v26, 2  ;;  %1813 = vrot.lane.b32.xlu1 %v1722_v31, %s2647_s16  ;;  %v875_v39 = vadd.f32 %v874_v29, %v873_v21  ;;  %v881_v40 = vrot.slane %v880_v30, 4  ;;  %v887_v41 = vsel %vm508_vm0, %v434_v23, 0.0  ;;  %v417_v31 = vld [vmem:[%s2711_s15 + $0x128] sm:$0xff] }
  0x5e   : > { %v851_v38 = vadd.f32 %v850_v28, %v849_v20  ;;  %v857_v42 = vrot.slane %v856_v34, 1  ;;  %v863_v43 = vadd.f32 %v862_v35, %v861_v25  ;;  %v888_v45 = vrot.slane %v887_v41, 4 }
  0x5f   : > { %v870_v44 = vadd.f32 %v869_v36, %v868_v26  ;;  %v876_v47 = vrot.slane %v875_v39, 2  ;;  %v882_v32 = vadd.f32 %v881_v40, %v880_v30  ;;  %v894_v48 = vsel %vm508_vm0, %v435_v33, 0.0 }
  0x60   : > { %v1460_v49 = vmul.f32 %v2752_v37, %v851_v38  ;;  %v858_v50 = vadd.f32 %v857_v42, %v856_v34  ;;  %v864_v51 = vrot.slane %v863_v43, 1  ;;  %v889_v53 = vadd.f32 %v888_v45, %v887_v41  ;;  %v418_v42 = vld [vmem:[%s2711_s15 + $0x130] sm:$0xff] }
  0x61   : > { %v871_v52 = vrot.slane %v870_v44, 1  ;;  %v877_v54 = vadd.f32 %v876_v47, %v875_v39  ;;  %v883_v55 = vrot.slane %v882_v32, 2  ;;  %v895_v56 = vrot.slane %v894_v48, 4 }
  0x62   : > { %v733_v57 = vsel %vm508_vm0, %v412_v46, 0.0  ;;  %v865_v58 = vadd.f32 %v864_v51, %v863_v43  ;;  %v890_v60 = vrot.slane %v889_v53, 2  ;;  %v1461_v61 = vmul.f32 %v2752_v37, %v858_v50 }
  0x63   : > { %v872_v59 = vadd.f32 %v871_v52, %v870_v44  ;;  %v878_v62 = vrot.slane %v877_v54, 1  ;;  %v884_v63 = vadd.f32 %v883_v55, %v882_v32  ;;  %v896_v0 = vadd.f32 %v895_v56, %v894_v48 }
  0x64   : > { %v734_v3 = vrot.slane %v733_v57, 4  ;;  %v891_v4 = vadd.f32 %v890_v60, %v889_v53  ;;  %v1462_v5 = vmul.f32 %v2752_v37, %v865_v58  ;;  %v1737_v7 = vsel %vm1688_vm2, %v1461_v61, %v1460_v49  ;;  %v419_v49 = vld [vmem:[%s2711_s15 + $0x138] sm:$0xff] }
  0x65   : > { %v1463_v6 = vmul.f32 %v2752_v37, %v872_v59  ;;  %v879_v8 = vadd.f32 %v878_v62, %v877_v54  ;;  %v885_v9 = vrot.slane %v884_v63, 1  ;;  %v897_v10 = vrot.slane %v896_v0, 2  ;;  %v436_v62 = vld [vmem:[%s2711_s15 + $0x1c0] sm:$0xff] }
  0x66   : > { %v735_v11 = vadd.f32 %v734_v3, %v733_v57  ;;  %v892_v12 = vrot.slane %v891_v4, 1  ;;  %v1738_v13 = vsel %vm1690_vm3, %v1462_v5, %v1737_v7  ;;  %v740_v15 = vsel %vm508_vm0, %v413_v1, 0.0 }
  0x67   : > { %v747_v16 = vsel %vm508_vm0, %v414_v2, 0.0  ;;  %v886_v17 = vadd.f32 %v885_v9, %v884_v63  ;;  %v898_v18 = vadd.f32 %v897_v10, %v896_v0  ;;  %v1464_v19 = vmul.f32 %v2752_v37, %v879_v8  ;;  %v437_v10 = vld [vmem:[%s2711_s15 + $0x1c8] sm:$0xff] }
  0x68   : > { %v1739_v20 = vsel %vm1692_vm4, %v1463_v6, %v1738_v13  ;;  %v893_v21 = vadd.f32 %v892_v12, %v891_v4  ;;  %v736_v23 = vrot.slane %v735_v11, 2  ;;  %v741_v24 = vrot.slane %v740_v15, 4 }
  0x69   : > { %v748_v25 = vrot.slane %v747_v16, 4  ;;  %v899_v26 = vrot.slane %v898_v18, 1  ;;  %v1465_v27 = vmul.f32 %v2752_v37, %v886_v17  ;;  %v1740_v28 = vsel %vm1694_vm5, %v1464_v19, %v1739_v20 }
  0x6a   : > { %v754_v29 = vsel %vm508_vm0, %v415_v14, 0.0  ;;  %v1466_v30 = vmul.f32 %v2752_v37, %v893_v21  ;;  %v737_v33 = vadd.f32 %v736_v23, %v735_v11  ;;  %v742_v34 = vadd.f32 %v741_v24, %v740_v15  ;;  %v438_v23 = vld [vmem:[%s2711_s15 + $0x1d0] sm:$0xff] }
  0x6b   : > { %v749_v35 = vadd.f32 %v748_v25, %v747_v16  ;;  %v900_v36 = vadd.f32 %v899_v26, %v898_v18  ;;  %v1741_v38 = vsel %vm1696_vm6, %v1465_v27, %v1740_v28  ;;  %v755_v39 = vrot.slane %v754_v29, 4 }
  0x6c   : > { %v761_v40 = vsel %vm508_vm0, %v416_v22, 0.0  ;;  %v1742_v41 = vsel %vm1698_vm7, %v1466_v30, %v1741_v38  ;;  %v738_v43 = vrot.slane %v737_v33, 1  ;;  %v743_v44 = vrot.slane %v742_v34, 2 }
  0x6d   : > { %v750_v45 = vrot.slane %v749_v35, 2  ;;  %v1467_v46 = vmul.f32 %v2752_v37, %v900_v36  ;;  %v756_v47 = vadd.f32 %v755_v39, %v754_v29  ;;  %v762_v32 = vrot.slane %v761_v40, 4 }
  0x6e   : > { %v768_v48 = vsel %vm508_vm0, %v417_v31, 0.0  ;;  %v739_v50 = vadd.f32 %v738_v43, %v737_v33  ;;  %v744_v51 = vadd.f32 %v743_v44, %v742_v34  ;;  %v775_v57 = vsel %vm508_vm0, %v418_v42, 0.0  ;;  %v439_v31 = vld [vmem:[%s2711_s15 + $0x1d8] sm:$0xff]  ;;  %v440_v42 = vld [vmem:[%s2711_s15 + $0x1e0] sm:$0xff] }
  0x6f   : > { %v751_v52 = vadd.f32 %v750_v45, %v749_v35  ;;  %v769_v53 = vrot.slane %v768_v48, 4  ;;  %v1743_v54 = vsel %vm1700_vm8, %v1467_v46, %v1742_v41  ;;  %v757_v55 = vrot.slane %v756_v47, 2 }
  0x70   : > { %v763_v56 = vadd.f32 %v762_v32, %v761_v40  ;;  %1819 = vrot.lane.b32.xlu0 %v1743_v54, %s2647_s16  ;;  %v745_v58 = vrot.slane %v744_v51, 1  ;;  %v776_v61 = vrot.slane %v775_v57, 4  ;;  %v782_v1 = vsel %vm508_vm0, %v419_v49, 0.0 }
  0x71   : > { %v752_v59 = vrot.slane %v751_v52, 1  ;;  %v770_v60 = vadd.f32 %v769_v53, %v768_v48  ;;  %v758_v63 = vadd.f32 %v757_v55, %v756_v47  ;;  %v1444_v2 = vmul.f32 %v2752_v37, %v739_v50  ;;  %v441_v50 = vld [vmem:[%s2711_s15 + $0x1e8] sm:$0xff] }
  0x72   : > { %v764_v0 = vrot.slane %v763_v56, 2  ;;  %v746_v3 = vadd.f32 %v745_v58, %v744_v51  ;;  %v777_v6 = vadd.f32 %v776_v61, %v775_v57  ;;  %v783_v9 = vrot.slane %v782_v1, 4  ;;  %v442_v58 = vld [vmem:[%s2711_s15 + $0x1f0] sm:$0xff] }
  0x73   : > { %v753_v4 = vadd.f32 %v752_v59, %v751_v52  ;;  %v771_v5 = vrot.slane %v770_v60, 2  ;;  %v759_v7 = vrot.slane %v758_v63, 1  ;;  %v901_v11 = vsel %vm508_vm0, %v436_v62, 0.0 }
  0x74   : > { %v765_v8 = vadd.f32 %v764_v0, %v763_v56  ;;  %v778_v13 = vrot.slane %v777_v6, 2  ;;  %v1445_v14 = vmul.f32 %v2752_v37, %v746_v3  ;;  %v784_v18 = vadd.f32 %v783_v9, %v782_v1 }
  0x75   : > { %v772_v12 = vadd.f32 %v771_v5, %v770_v60  ;;  %v1446_v15 = vmul.f32 %v2752_v37, %v753_v4  ;;  %v760_v16 = vadd.f32 %v759_v7, %v758_v63  ;;  %v902_v19 = vrot.slane %v901_v11, 4 }
  0x76   : > { %v766_v17 = vrot.slane %v765_v8, 1  ;;  %v779_v21 = vadd.f32 %v778_v13, %v777_v6  ;;  %v1723_v22 = vsel %vm1688_vm2, %v1445_v14, %v1444_v2  ;;  %v908_v24 = vsel %vm508_vm0, %v437_v10, 0.0  ;;  %v443_v2 = vld [vmem:[%s2711_s15 + $0x1f8] sm:$0xff] }
  0x77   : > { %v773_v20 = vrot.slane %v772_v12, 1  ;;  %v785_v26 = vrot.slane %v784_v18, 2  ;;  %v1447_v27 = vmul.f32 %v2752_v37, %v760_v16  ;;  %v1724_v28 = vsel %vm1690_vm3, %v1446_v15, %v1723_v22  ;;  %v420_v15 = vld [vmem:[%s2711_s15 + $0x140] sm:$0xff] }
  0x78   : > { %v767_v25 = vadd.f32 %v766_v17, %v765_v8  ;;  %v780_v30 = vrot.slane %v779_v21, 1  ;;  %v903_v33 = vadd.f32 %v902_v19, %v901_v11  ;;  %v909_v34 = vrot.slane %v908_v24, 4 }
  0x79   : > { %v774_v29 = vadd.f32 %v773_v20, %v772_v12  ;;  %v786_v35 = vadd.f32 %v785_v26, %v784_v18  ;;  %v1725_v38 = vsel %vm1692_vm4, %v1447_v27, %v1724_v28  ;;  %v915_v39 = vsel %vm508_vm0, %v438_v23, 0.0 }
  0x7a   : > { %v1448_v36 = vmul.f32 %v2752_v37, %v767_v25  ;;  %v781_v40 = vadd.f32 %v780_v30, %v779_v21  ;;  %v904_v43 = vrot.slane %v903_v33, 2  ;;  %v910_v44 = vadd.f32 %v909_v34, %v908_v24 }
  0x7b   : > { %v1449_v41 = vmul.f32 %v2752_v37, %v774_v29  ;;  %v787_v45 = vrot.slane %v786_v35, 1  ;;  %v916_v47 = vrot.slane %v915_v39, 4  ;;  %v922_v32 = vsel %vm508_vm0, %v439_v31, 0.0 }
  0x7c   : > { %v1726_v46 = vsel %vm1694_vm5, %v1448_v36, %v1725_v38  ;;  %v1450_v48 = vmul.f32 %v2752_v37, %v781_v40  ;;  %v905_v51 = vadd.f32 %v904_v43, %v903_v33  ;;  %v911_v52 = vrot.slane %v910_v44, 2  ;;  %v421_v33 = vld [vmem:[%s2711_s15 + $0x148] sm:$0xff]  ;;  %v422_v43 = vld [vmem:[%s2711_s15 + $0x150] sm:$0xff] }
  0x7d   : > { %v1727_v49 = vsel %vm1696_vm6, %v1449_v41, %v1726_v46  ;;  %v788_v53 = vadd.f32 %v787_v45, %v786_v35  ;;  %v917_v54 = vadd.f32 %v916_v47, %v915_v39  ;;  %v923_v55 = vrot.slane %v922_v32, 4 }
  0x7e   : > { %v929_v56 = vsel %vm508_vm0, %v440_v42, 0.0  ;;  %v1728_v57 = vsel %vm1698_vm7, %v1450_v48, %v1727_v49  ;;  %v906_v59 = vrot.slane %v905_v51, 1  ;;  %v912_v60 = vadd.f32 %v911_v52, %v910_v44 }
  0x7f   : > { %v930_v61 = vrot.slane %v929_v56, 4  ;;  %v1451_v62 = vmul.f32 %v2752_v37, %v788_v53  ;;  %v918_v63 = vrot.slane %v917_v54, 2  ;;  %v924_v0 = vadd.f32 %v923_v55, %v922_v32 }
  0x80   : > { %v936_v1 = vsel %vm508_vm0, %v441_v50, 0.0  ;;  %v907_v3 = vadd.f32 %v906_v59, %v905_v51  ;;  %v913_v4 = vrot.slane %v912_v60, 1  ;;  %v943_v10 = vsel %vm508_vm0, %v442_v58, 0.0  ;;  %v423_v51 = vld [vmem:[%s2711_s15 + $0x158] sm:$0xff] }
  0x81   : > { %v931_v5 = vadd.f32 %v930_v61, %v929_v56  ;;  %v937_v6 = vrot.slane %v936_v1, 4  ;;  %v1729_v7 = vsel %vm1700_vm8, %v1451_v62, %v1728_v57  ;;  %v919_v8 = vadd.f32 %v918_v63, %v917_v54 }
  0x82   : > { %v925_v9 = vrot.slane %v924_v0, 2  ;;  %1815 = vrot.lane.b32.xlu2 %v1729_v7, %s2647_s16  ;;  %v914_v11 = vadd.f32 %v913_v4, %v912_v60  ;;  %v944_v14 = vrot.slane %v943_v10, 4  ;;  %v950_v18 = vsel %vm508_vm0, %v443_v2, 0.0  ;;  %v424_v60 = vld [vmem:[%s2711_s15 + $0x160] sm:$0xff]  ;;  %v425_v4 = vld [vmem:[%s2711_s15 + $0x168] sm:$0xff] }
  0x83   : > { %v932_v12 = vrot.slane %v931_v5, 2  ;;  %v938_v13 = vadd.f32 %v937_v6, %v936_v1  ;;  %v920_v16 = vrot.slane %v919_v8, 1  ;;  %v1468_v19 = vmul.f32 %v2752_v37, %v907_v3 }
  0x84   : > { %v926_v17 = vadd.f32 %v925_v9, %v924_v0  ;;  %v945_v22 = vadd.f32 %v944_v14, %v943_v10  ;;  %v951_v23 = vrot.slane %v950_v18, 4  ;;  %v1469_v26 = vmul.f32 %v2752_v37, %v914_v11 }
  0x85   : > { %v933_v20 = vadd.f32 %v932_v12, %v931_v5  ;;  %v939_v21 = vrot.slane %v938_v13, 2  ;;  %v921_v24 = vadd.f32 %v920_v16, %v919_v8  ;;  %v789_v27 = vsel %vm508_vm0, %v420_v15, 0.0  ;;  %v426_v12 = vld [vmem:[%s2711_s15 + $0x170] sm:$0xff] }
  0x86   : > { %v927_v25 = vrot.slane %v926_v17, 1  ;;  %v946_v30 = vrot.slane %v945_v22, 2  ;;  %v952_v31 = vadd.f32 %v951_v23, %v950_v18  ;;  %v1744_v36 = vsel %vm1688_vm2, %v1469_v26, %v1468_v19 }
  0x87   : > { %v934_v28 = vrot.slane %v933_v20, 1  ;;  %v940_v29 = vadd.f32 %v939_v21, %v938_v13  ;;  %v1470_v35 = vmul.f32 %v2752_v37, %v921_v24  ;;  %v790_v38 = vrot.slane %v789_v27, 4  ;;  %v427_v13 = vld [vmem:[%s2711_s15 + $0x178] sm:$0xff] }
  0x88   : > { %v928_v34 = vadd.f32 %v927_v25, %v926_v17  ;;  %v947_v41 = vadd.f32 %v946_v30, %v945_v22  ;;  %v953_v42 = vrot.slane %v952_v31, 2  ;;  %v796_v47 = vsel %vm508_vm0, %v421_v33, 0.0  ;;  %v452_v33 = vld [vmem:[%s2711_s15 + $0x240] sm:$0xff] }
  0x89   : > { %v935_v39 = vadd.f32 %v934_v28, %v933_v20  ;;  %v941_v40 = vrot.slane %v940_v29, 1  ;;  %v1745_v45 = vsel %vm1690_vm3, %v1470_v35, %v1744_v36  ;;  %v791_v46 = vadd.f32 %v790_v38, %v789_v27 }
  0x8a   : > { %v1471_v44 = vmul.f32 %v2752_v37, %v928_v34  ;;  %v948_v48 = vrot.slane %v947_v41, 1  ;;  %v954_v49 = vadd.f32 %v953_v42, %v952_v31  ;;  %v797_v54 = vrot.slane %v796_v47, 4 }
  0x8b   : > { %v942_v32 = vadd.f32 %v941_v40, %v940_v29  ;;  %v1472_v50 = vmul.f32 %v2752_v37, %v935_v39  ;;  %v792_v53 = vrot.slane %v791_v46, 2  ;;  %v803_v55 = vsel %vm508_vm0, %v422_v43, 0.0 }
  0x8c   : > { %v1746_v52 = vsel %vm1692_vm4, %v1471_v44, %v1745_v45  ;;  %v949_v56 = vadd.f32 %v948_v48, %v947_v41  ;;  %v955_v57 = vrot.slane %v954_v49, 1  ;;  %v798_v62 = vadd.f32 %v797_v54, %v796_v47 }
  0x8d   : > { %v1473_v58 = vmul.f32 %v2752_v37, %v942_v32  ;;  %v1747_v59 = vsel %vm1694_vm5, %v1472_v50, %v1746_v52  ;;  %v793_v61 = vadd.f32 %v792_v53, %v791_v46  ;;  %v804_v63 = vrot.slane %v803_v55, 4  ;;  %v453_v50 = vld [vmem:[%s2711_s15 + $0x248] sm:$0xff] }
  0x8e   : > { %v810_v0 = vsel %vm508_vm0, %v423_v51, 0.0  ;;  %v956_v1 = vadd.f32 %v955_v57, %v954_v49  ;;  %v1474_v2 = vmul.f32 %v2752_v37, %v949_v56  ;;  %v799_v7 = vrot.slane %v798_v62, 2 }
  0x8f   : > { %v1748_v3 = vsel %vm1696_vm6, %v1473_v58, %v1747_v59  ;;  %v811_v5 = vrot.slane %v810_v0, 4  ;;  %v794_v6 = vrot.slane %v793_v61, 1  ;;  %v805_v8 = vadd.f32 %v804_v63, %v803_v55  ;;  %v454_v59 = vld [vmem:[%s2711_s15 + $0x250] sm:$0xff] }
  0x90   : > { %v817_v9 = vsel %vm508_vm0, %v424_v60, 0.0  ;;  %v1475_v10 = vmul.f32 %v2752_v37, %v956_v1  ;;  %v1749_v11 = vsel %vm1698_vm7, %v1474_v2, %v1748_v3  ;;  %v800_v17 = vadd.f32 %v799_v7, %v798_v62 }
  0x91   : > { %v812_v14 = vadd.f32 %v811_v5, %v810_v0  ;;  %v818_v15 = vrot.slane %v817_v9, 4  ;;  %v795_v16 = vadd.f32 %v794_v6, %v793_v61  ;;  %v806_v18 = vrot.slane %v805_v8, 2 }
  0x92   : > { %v824_v19 = vsel %vm508_vm0, %v425_v4, 0.0  ;;  %v1750_v20 = vsel %vm1700_vm8, %v1475_v10, %v1749_v11  ;;  %v801_v24 = vrot.slane %v800_v17, 1  ;;  %v831_v26 = vsel %vm508_vm0, %v426_v12, 0.0  ;;  %v455_v4 = vld [vmem:[%s2711_s15 + $0x258] sm:$0xff]  ;;  %v456_v12 = vld [vmem:[%s2711_s15 + $0x260] sm:$0xff] }
  0x93   : > { %v813_v21 = vrot.slane %v812_v14, 2  ;;  %v819_v22 = vadd.f32 %v818_v15, %v817_v9  ;;  %v825_v23 = vrot.slane %v824_v19, 4  ;;  %1821 = vrot.lane.b32.xlu1 %v1750_v20, %s2647_s16  ;;  %v807_v25 = vadd.f32 %v806_v18, %v805_v8  ;;  %v457_v20 = vld [vmem:[%s2711_s15 + $0x268] sm:$0xff] }
  0x94   : > { %v838_v27 = vsel %vm508_vm0, %v427_v13, 0.0  ;;  %v832_v31 = vrot.slane %v831_v26, 4  ;;  %v802_v34 = vadd.f32 %v801_v24, %v800_v17  ;;  %v1452_v38 = vmul.f32 %v2752_v37, %v795_v16 }
  0x95   : > { %v814_v28 = vadd.f32 %v813_v21, %v812_v14  ;;  %v820_v29 = vrot.slane %v819_v22, 2  ;;  %v826_v30 = vadd.f32 %v825_v23, %v824_v19  ;;  %v808_v35 = vrot.slane %v807_v25, 1 }
  0x96   : > { %v839_v36 = vrot.slane %v838_v27, 4  ;;  %v833_v42 = vadd.f32 %v832_v31, %v831_v26  ;;  %v1453_v45 = vmul.f32 %v2752_v37, %v802_v34  ;;  %v1013_v46 = vsel %vm508_vm0, %v452_v33, 0.0 }
  0x97   : > { %v815_v39 = vrot.slane %v814_v28, 1  ;;  %v821_v40 = vadd.f32 %v820_v29, %v819_v22  ;;  %v827_v41 = vrot.slane %v826_v30, 2  ;;  %v809_v43 = vadd.f32 %v808_v35, %v807_v25  ;;  %v459_v29 = vld [vmem:[%s2711_s15 + $0x278] sm:$0xff] }
  0x98   : > { %v840_v44 = vadd.f32 %v839_v36, %v838_v27  ;;  %v834_v49 = vrot.slane %v833_v42, 2  ;;  %v1730_v53 = vsel %vm1688_vm2, %v1453_v45, %v1452_v38  ;;  %v1014_v54 = vrot.slane %v1013_v46, 4 }
  0x99   : > { %v816_v47 = vadd.f32 %v815_v39, %v814_v28  ;;  %v822_v32 = vrot.slane %v821_v40, 1  ;;  %v828_v48 = vadd.f32 %v827_v41, %v826_v30  ;;  %v1454_v52 = vmul.f32 %v2752_v37, %v809_v43  ;;  %v458_v28 = vld [vmem:[%s2711_s15 + $0x270] sm:$0xff]  ;;  %v460_v43 = vld [vmem:[%s2711_s15 + $0x280] sm:$0xff] }
  0x9a   : > { %v841_v51 = vrot.slane %v840_v44, 2  ;;  %v835_v57 = vadd.f32 %v834_v49, %v833_v42  ;;  %v1015_v62 = vadd.f32 %v1014_v54, %v1013_v46  ;;  %v1020_v63 = vsel %vm508_vm0, %v453_v50, 0.0 }
  0x9b   : > { %v823_v55 = vadd.f32 %v822_v32, %v821_v40  ;;  %v829_v56 = vrot.slane %v828_v48, 1  ;;  %v1455_v58 = vmul.f32 %v2752_v37, %v816_v47  ;;  %v1731_v61 = vsel %vm1690_vm3, %v1454_v52, %v1730_v53 }
  0x9c   : > { %v842_v60 = vadd.f32 %v841_v51, %v840_v44  ;;  %v836_v1 = vrot.slane %v835_v57, 1  ;;  %v1016_v6 = vrot.slane %v1015_v62, 2  ;;  %v1021_v7 = vrot.slane %v1020_v63, 4 }
  0x9d   : > { %v830_v0 = vadd.f32 %v829_v56, %v828_v48  ;;  %v1456_v2 = vmul.f32 %v2752_v37, %v823_v55  ;;  %v1732_v3 = vsel %vm1692_vm4, %v1455_v58, %v1731_v61  ;;  %v1027_v8 = vsel %vm508_vm0, %v454_v59, 0.0 }
  0x9e   : > { %v843_v5 = vrot.slane %v842_v60, 1  ;;  %v837_v9 = vadd.f32 %v836_v1, %v835_v57  ;;  %v1028_v13 = vrot.slane %v1027_v8, 4  ;;  %v1017_v15 = vadd.f32 %v1016_v6, %v1015_v62 }
  0x9f   : > { %v1457_v10 = vmul.f32 %v2752_v37, %v830_v0  ;;  %v1733_v11 = vsel %vm1694_vm5, %v1456_v2, %v1732_v3  ;;  %v1022_v16 = vadd.f32 %v1021_v7, %v1020_v63  ;;  %v1034_v17 = vsel %vm508_vm0, %v455_v4, 0.0  ;;  %v461_v3 = vld [vmem:[%s2711_s15 + $0x288] sm:$0xff] }
  0xa0   : > { %v844_v14 = vadd.f32 %v843_v5, %v842_v60  ;;  %v1458_v18 = vmul.f32 %v2752_v37, %v837_v9  ;;  %v1029_v21 = vadd.f32 %v1028_v13, %v1027_v8  ;;  %v1035_v22 = vrot.slane %v1034_v17, 4 }
  0xa1   : > { %v1734_v19 = vsel %vm1696_vm6, %v1457_v10, %v1733_v11  ;;  %v1018_v24 = vrot.slane %v1017_v15, 1  ;;  %v1023_v25 = vrot.slane %v1022_v16, 2  ;;  %v1041_v26 = vsel %vm508_vm0, %v456_v12, 0.0  ;;  %v462_v12 = vld [vmem:[%s2711_s15 + $0x290] sm:$0xff] }
  0xa2   : > { %v1459_v23 = vmul.f32 %v2752_v37, %v844_v14  ;;  %v1735_v27 = vsel %vm1698_vm7, %v1458_v18, %v1734_v19  ;;  %v1030_v30 = vrot.slane %v1029_v21, 2  ;;  %v1036_v31 = vadd.f32 %v1035_v22, %v1034_v17 }
  0xa3   : > { %v1042_v33 = vrot.slane %v1041_v26, 4  ;;  %v1019_v35 = vadd.f32 %v1018_v24, %v1017_v15  ;;  %v1024_v36 = vadd.f32 %v1023_v25, %v1022_v16  ;;  %v1048_v38 = vsel %vm508_vm0, %v457_v20, 0.0  ;;  %v463_v20 = vld [vmem:[%s2711_s15 + $0x298] sm:$0xff] }
  0xa4   : > { %v1736_v34 = vsel %vm1700_vm8, %v1459_v23, %v1735_v27  ;;  %v1031_v39 = vadd.f32 %v1030_v30, %v1029_v21  ;;  %v1037_v40 = vrot.slane %v1036_v31, 2  ;;  %v1049_v42 = vrot.slane %v1048_v38, 4 }
  0xa5   : > { %1817 = vrot.lane.b32.xlu2 %v1736_v34, %s2647_s16  ;;  %v1043_v41 = vadd.f32 %v1042_v33, %v1041_v26  ;;  %v1025_v44 = vrot.slane %v1024_v36, 1  ;;  %v1055_v45 = vsel %vm508_vm0, %v458_v28, 0.0  ;;  %v1062_v46 = vsel %vm508_vm0, %v459_v29, 0.0  ;;  %v464_v28 = vld [vmem:[%s2711_s15 + $0x2a0] sm:$0xff] }
  0xa6   : > { %v1484_v47 = vmul.f32 %v2752_v37, %v1019_v35  ;;  %v1032_v32 = vrot.slane %v1031_v39, 1  ;;  %v1038_v48 = vadd.f32 %v1037_v40, %v1036_v31  ;;  %v1050_v50 = vadd.f32 %v1049_v42, %v1048_v38  ;;  %v465_v38 = vld [vmem:[%s2711_s15 + $0x2a8] sm:$0xff]  ;;  %v467_v40 = vld [vmem:[%s2711_s15 + $0x2b8] sm:$0xff] }
  0xa7   : > { %v1044_v49 = vrot.slane %v1043_v41, 2  ;;  %v1026_v51 = vadd.f32 %v1025_v44, %v1024_v36  ;;  %v1056_v52 = vrot.slane %v1055_v45, 4  ;;  %v1063_v53 = vrot.slane %v1062_v46, 4 }
  0xa8   : > { %v1069_v54 = vsel %vm508_vm0, %v460_v43, 0.0  ;;  %v1033_v55 = vadd.f32 %v1032_v32, %v1031_v39  ;;  %v1039_v56 = vrot.slane %v1038_v48, 1  ;;  %v1051_v58 = vrot.slane %v1050_v50, 2  ;;  %v466_v39 = vld [vmem:[%s2711_s15 + $0x2b0] sm:$0xff] }
  0xa9   : > { %v1045_v57 = vadd.f32 %v1044_v49, %v1043_v41  ;;  %v1057_v59 = vadd.f32 %v1056_v52, %v1055_v45  ;;  %v1064_v60 = vadd.f32 %v1063_v53, %v1062_v46  ;;  %v1485_v61 = vmul.f32 %v2752_v37, %v1026_v51 }
  0xaa   : > { %v1070_v62 = vrot.slane %v1069_v54, 4  ;;  %v1040_v63 = vadd.f32 %v1039_v56, %v1038_v48  ;;  %v1052_v1 = vadd.f32 %v1051_v58, %v1050_v50  ;;  %v1486_v2 = vmul.f32 %v2752_v37, %v1033_v55 }
  0xab   : > { %v1046_v0 = vrot.slane %v1045_v57, 1  ;;  %v1058_v4 = vrot.slane %v1057_v59, 2  ;;  %v1065_v5 = vrot.slane %v1064_v60, 2  ;;  %v1758_v6 = vsel %vm1688_vm2, %v1485_v61, %v1484_v47 }
  0xac   : > { %v1071_v7 = vadd.f32 %v1070_v62, %v1069_v54  ;;  %v1053_v9 = vrot.slane %v1052_v1, 1  ;;  %v1487_v10 = vmul.f32 %v2752_v37, %v1040_v63  ;;  %v1759_v11 = vsel %vm1690_vm3, %v1486_v2, %v1758_v6  ;;  %v444_v63 = vld [vmem:[%s2711_s15 + $0x200] sm:$0xff] }
  0xad   : > { %v1047_v8 = vadd.f32 %v1046_v0, %v1045_v57  ;;  %v1059_v13 = vadd.f32 %v1058_v4, %v1057_v59  ;;  %v1066_v14 = vadd.f32 %v1065_v5, %v1064_v60  ;;  %v1076_v16 = vsel %vm508_vm0, %v461_v3, 0.0 }
  0xae   : > { %v1072_v15 = vrot.slane %v1071_v7, 2  ;;  %v1054_v17 = vadd.f32 %v1053_v9, %v1052_v1  ;;  %v1760_v19 = vsel %vm1692_vm4, %v1487_v10, %v1759_v11  ;;  %v1077_v21 = vrot.slane %v1076_v16, 4 }
  0xaf   : > { %v1488_v18 = vmul.f32 %v2752_v37, %v1047_v8  ;;  %v1060_v22 = vrot.slane %v1059_v13, 1  ;;  %v1067_v23 = vrot.slane %v1066_v14, 1  ;;  %v1083_v25 = vsel %vm508_vm0, %v462_v12, 0.0 }
  0xb0   : > { %v1073_v24 = vadd.f32 %v1072_v15, %v1071_v7  ;;  %v1489_v26 = vmul.f32 %v2752_v37, %v1054_v17  ;;  %v1078_v29 = vadd.f32 %v1077_v21, %v1076_v16  ;;  %v1084_v30 = vrot.slane %v1083_v25, 4  ;;  %v445_v16 = vld [vmem:[%s2711_s15 + $0x208] sm:$0xff] }
  0xb1   : > { %v1761_v27 = vsel %vm1694_vm5, %v1488_v18, %v1760_v19  ;;  %v1061_v31 = vadd.f32 %v1060_v22, %v1059_v13  ;;  %v1068_v33 = vadd.f32 %v1067_v23, %v1066_v14  ;;  %v1090_v35 = vsel %vm508_vm0, %v463_v20, 0.0 }
  0xb2   : > { %v1074_v34 = vrot.slane %v1073_v24, 1  ;;  %v1762_v36 = vsel %vm1696_vm6, %v1489_v26, %v1761_v27  ;;  %v1079_v41 = vrot.slane %v1078_v29, 2  ;;  %v1085_v42 = vadd.f32 %v1084_v30, %v1083_v25  ;;  %v446_v25 = vld [vmem:[%s2711_s15 + $0x210] sm:$0xff] }
  0xb3   : > { %v1091_v43 = vrot.slane %v1090_v35, 4  ;;  %v1490_v44 = vmul.f32 %v2752_v37, %v1061_v31  ;;  %v1491_v45 = vmul.f32 %v2752_v37, %v1068_v33  ;;  %v1097_v47 = vsel %vm508_vm0, %v464_v28, 0.0 }
  0xb4   : > { %v1075_v46 = vadd.f32 %v1074_v34, %v1073_v24  ;;  %v1080_v32 = vadd.f32 %v1079_v41, %v1078_v29  ;;  %v1086_v48 = vrot.slane %v1085_v42, 2  ;;  %v1098_v50 = vrot.slane %v1097_v47, 4 }
  0xb5   : > { %v1092_v49 = vadd.f32 %v1091_v43, %v1090_v35  ;;  %v1763_v51 = vsel %vm1698_vm7, %v1490_v44, %v1762_v36  ;;  %v1104_v52 = vsel %vm508_vm0, %v465_v38, 0.0  ;;  %v1111_v53 = vsel %vm508_vm0, %v466_v39, 0.0  ;;  %v447_v35 = vld [vmem:[%s2711_s15 + $0x218] sm:$0xff] }
  0xb6   : > { %v1118_v54 = vsel %vm508_vm0, %v467_v40, 0.0  ;;  %v1764_v55 = vsel %vm1700_vm8, %v1491_v45, %v1763_v51  ;;  %v1081_v56 = vrot.slane %v1080_v32, 1  ;;  %v1087_v57 = vadd.f32 %v1086_v48, %v1085_v42  ;;  %v448_v45 = vld [vmem:[%s2711_s15 + $0x220] sm:$0xff] }
  0xb7   : > { %v1093_v58 = vrot.slane %v1092_v49, 2  ;;  %1825 = vrot.lane.b32.xlu0 %v1764_v55, %s2647_s16  ;;  %v1099_v59 = vadd.f32 %v1098_v50, %v1097_v47  ;;  %v1105_v60 = vrot.slane %v1104_v52, 4  ;;  %v1112_v61 = vrot.slane %v1111_v53, 4  ;;  %v450_v47 = vld [vmem:[%s2711_s15 + $0x230] sm:$0xff] }
  0xb8   : > { %v1119_v62 = vrot.slane %v1118_v54, 4  ;;  %v1082_v0 = vadd.f32 %v1081_v56, %v1080_v32  ;;  %v1088_v1 = vrot.slane %v1087_v57, 1  ;;  %v1492_v3 = vmul.f32 %v2752_v37, %v1075_v46  ;;  %v449_v46 = vld [vmem:[%s2711_s15 + $0x228] sm:$0xff] }
  0xb9   : > { %v1094_v2 = vadd.f32 %v1093_v58, %v1092_v49  ;;  %v1100_v4 = vrot.slane %v1099_v59, 2  ;;  %v1106_v5 = vadd.f32 %v1105_v60, %v1104_v52  ;;  %v1113_v6 = vadd.f32 %v1112_v61, %v1111_v53  ;;  %v451_v60 = vld [vmem:[%s2711_s15 + $0x238] sm:$0xff] }
  0xba   : > { %v1120_v7 = vadd.f32 %v1119_v62, %v1118_v54  ;;  %v1089_v8 = vadd.f32 %v1088_v1, %v1087_v57  ;;  %v1493_v10 = vmul.f32 %v2752_v37, %v1082_v0  ;;  %v957_v11 = vsel %vm508_vm0, %v444_v63, 0.0 }
  0xbb   : > { %v1095_v9 = vrot.slane %v1094_v2, 1  ;;  %v1101_v12 = vadd.f32 %v1100_v4, %v1099_v59  ;;  %v1107_v13 = vrot.slane %v1106_v5, 2  ;;  %v1114_v14 = vrot.slane %v1113_v6, 2 }
  0xbc   : > { %v1121_v15 = vrot.slane %v1120_v7, 2  ;;  %v1494_v18 = vmul.f32 %v2752_v37, %v1089_v8  ;;  %v1765_v19 = vsel %vm1688_vm2, %v1493_v10, %v1492_v3  ;;  %v958_v20 = vrot.slane %v957_v11, 4 }
  0xbd   : > { %v1096_v17 = vadd.f32 %v1095_v9, %v1094_v2  ;;  %v1102_v21 = vrot.slane %v1101_v12, 1  ;;  %v1108_v22 = vadd.f32 %v1107_v13, %v1106_v5  ;;  %v1115_v23 = vadd.f32 %v1114_v14, %v1113_v6 }
  0xbe   : > { %v1122_v24 = vadd.f32 %v1121_v15, %v1120_v7  ;;  %v1766_v27 = vsel %vm1690_vm3, %v1494_v18, %v1765_v19  ;;  %v959_v28 = vadd.f32 %v958_v20, %v957_v11  ;;  %v964_v29 = vsel %vm508_vm0, %v445_v16, 0.0  ;;  %v468_v16 = vld [vmem:[%s2711_s15 + $0x2c0] sm:$0xff] }
  0xbf   : > { %v1495_v26 = vmul.f32 %v2752_v37, %v1096_v17  ;;  %v1103_v30 = vadd.f32 %v1102_v21, %v1101_v12  ;;  %v1109_v31 = vrot.slane %v1108_v22, 1  ;;  %v1116_v33 = vrot.slane %v1115_v23, 1 }
  0xc0   : > { %v1123_v34 = vrot.slane %v1122_v24, 1  ;;  %v960_v38 = vrot.slane %v959_v28, 2  ;;  %v965_v39 = vrot.slane %v964_v29, 4  ;;  %v971_v40 = vsel %vm508_vm0, %v446_v25, 0.0 }
  0xc1   : > { %v1767_v36 = vsel %vm1692_vm4, %v1495_v26, %v1766_v27  ;;  %v1110_v41 = vadd.f32 %v1109_v31, %v1108_v22  ;;  %v1117_v42 = vadd.f32 %v1116_v33, %v1115_v23  ;;  %v1496_v44 = vmul.f32 %v2752_v37, %v1103_v30 }
  0xc2   : > { %v1124_v43 = vadd.f32 %v1123_v34, %v1122_v24  ;;  %v961_v32 = vadd.f32 %v960_v38, %v959_v28  ;;  %v966_v48 = vadd.f32 %v965_v39, %v964_v29  ;;  %v972_v49 = vrot.slane %v971_v40, 4  ;;  %v469_v34 = vld [vmem:[%s2711_s15 + $0x2c8] sm:$0xff] }
  0xc3   : > { %v978_v50 = vsel %vm508_vm0, %v447_v35, 0.0  ;;  %v1497_v51 = vmul.f32 %v2752_v37, %v1110_v41  ;;  %v1498_v52 = vmul.f32 %v2752_v37, %v1117_v42  ;;  %v1768_v54 = vsel %vm1694_vm5, %v1496_v44, %v1767_v36  ;;  %v470_v44 = vld [vmem:[%s2711_s15 + $0x2d0] sm:$0xff] }
  0xc4   : > { %v1499_v53 = vmul.f32 %v2752_v37, %v1124_v43  ;;  %v962_v55 = vrot.slane %v961_v32, 1  ;;  %v967_v56 = vrot.slane %v966_v48, 2  ;;  %v973_v57 = vadd.f32 %v972_v49, %v971_v40 }
  0xc5   : > { %v979_v58 = vrot.slane %v978_v50, 4  ;;  %v1769_v59 = vsel %vm1696_vm6, %v1497_v51, %v1768_v54  ;;  %v985_v61 = vsel %vm508_vm0, %v448_v45, 0.0  ;;  %v992_v62 = vsel %vm508_vm0, %v449_v46, 0.0  ;;  %v472_v54 = vld [vmem:[%s2711_s15 + $0x2e0] sm:$0xff] }
  0xc6   : > { %v999_v63 = vsel %vm508_vm0, %v450_v47, 0.0  ;;  %v1770_v0 = vsel %vm1698_vm7, %v1498_v52, %v1769_v59  ;;  %v963_v1 = vadd.f32 %v962_v55, %v961_v32  ;;  %v968_v2 = vadd.f32 %v967_v56, %v966_v48 }
  0xc7   : > { %v974_v3 = vrot.slane %v973_v57, 2  ;;  %v1771_v4 = vsel %vm1700_vm8, %v1499_v53, %v1770_v0  ;;  %v980_v5 = vadd.f32 %v979_v58, %v978_v50  ;;  %v986_v6 = vrot.slane %v985_v61, 4  ;;  %v471_v53 = vld [vmem:[%s2711_s15 + $0x2d8] sm:$0xff] }
  0xc8   : > { %v993_v7 = vrot.slane %v992_v62, 4  ;;  %1827 = vrot.lane.b32.xlu1 %v1771_v4, %s2647_s16  ;;  %v969_v8 = vrot.slane %v968_v2, 1  ;;  %v1000_v10 = vrot.slane %v999_v63, 4  ;;  %v1006_v11 = vsel %vm508_vm0, %v451_v60, 0.0 }
  0xc9   : > { %v975_v9 = vadd.f32 %v974_v3, %v973_v57  ;;  %v981_v12 = vrot.slane %v980_v5, 2  ;;  %v987_v13 = vadd.f32 %v986_v6, %v985_v61  ;;  %v1007_v15 = vrot.slane %v1006_v11, 4 }
  0xca   : > { %v994_v14 = vadd.f32 %v993_v7, %v992_v62  ;;  %v970_v17 = vadd.f32 %v969_v8, %v968_v2  ;;  %v1001_v19 = vadd.f32 %v1000_v10, %v999_v63  ;;  %v1476_v20 = vmul.f32 %v2752_v37, %v963_v1  ;;  %v473_v63 = vld [vmem:[%s2711_s15 + $0x2e8] sm:$0xff]  ;;  %v474_v8 = vld [vmem:[%s2711_s15 + $0x2f0] sm:$0xff] }
  0xcb   : > { %v976_v18 = vrot.slane %v975_v9, 1  ;;  %v982_v21 = vadd.f32 %v981_v12, %v980_v5  ;;  %v988_v22 = vrot.slane %v987_v13, 2  ;;  %v1008_v24 = vadd.f32 %v1007_v15, %v1006_v11 }
  0xcc   : > { %v995_v23 = vrot.slane %v994_v14, 2  ;;  %v1002_v26 = vrot.slane %v1001_v19, 2  ;;  %v1477_v27 = vmul.f32 %v2752_v37, %v970_v17  ;;  %v1125_v28 = vsel %vm508_vm0, %v468_v16, 0.0 }
  0xcd   : > { %v977_v25 = vadd.f32 %v976_v18, %v975_v9  ;;  %v983_v29 = vrot.slane %v982_v21, 1  ;;  %v989_v30 = vadd.f32 %v988_v22, %v987_v13  ;;  %v1009_v33 = vrot.slane %v1008_v24, 2  ;;  %v475_v13 = vld [vmem:[%s2711_s15 + $0x2f8] sm:$0xff] }
  0xce   : > { %v996_v31 = vadd.f32 %v995_v23, %v994_v14  ;;  %v1003_v35 = vadd.f32 %v1002_v26, %v1001_v19  ;;  %v1751_v38 = vsel %vm1688_vm2, %v1477_v27, %v1476_v20  ;;  %v1126_v39 = vrot.slane %v1125_v28, 4 }
  0xcf   : > { %v1478_v36 = vmul.f32 %v2752_v37, %v977_v25  ;;  %v984_v40 = vadd.f32 %v983_v29, %v982_v21  ;;  %v990_v41 = vrot.slane %v989_v30, 1  ;;  %v1010_v43 = vadd.f32 %v1009_v33, %v1008_v24 }
  0xd0   : > { %v997_v42 = vrot.slane %v996_v31, 1  ;;  %v1004_v45 = vrot.slane %v1003_v35, 1  ;;  %v1127_v47 = vadd.f32 %v1126_v39, %v1125_v28  ;;  %v1132_v32 = vsel %vm508_vm0, %v469_v34, 0.0  ;;  %v484_v34 = vld [vmem:[%s2711_s15 + $0x340] sm:$0xff] }
  0xd1   : > { %v1752_v46 = vsel %vm1690_vm3, %v1478_v36, %v1751_v38  ;;  %v991_v48 = vadd.f32 %v990_v41, %v989_v30  ;;  %v1011_v50 = vrot.slane %v1010_v43, 1  ;;  %v1479_v51 = vmul.f32 %v2752_v37, %v984_v40 }
  0xd2   : > { %v998_v49 = vadd.f32 %v997_v42, %v996_v31  ;;  %v1005_v52 = vadd.f32 %v1004_v45, %v1003_v35  ;;  %v1128_v55 = vrot.slane %v1127_v47, 2  ;;  %v1133_v56 = vrot.slane %v1132_v32, 4 }
  0xd3   : > { %v1139_v57 = vsel %vm508_vm0, %v470_v44, 0.0  ;;  %v1012_v58 = vadd.f32 %v1011_v50, %v1010_v43  ;;  %v1480_v59 = vmul.f32 %v2752_v37, %v991_v48  ;;  %v1753_v61 = vsel %vm1692_vm4, %v1479_v51, %v1752_v46  ;;  %v485_v51 = vld [vmem:[%s2711_s15 + $0x348] sm:$0xff] }
  0xd4   : > { %v1481_v60 = vmul.f32 %v2752_v37, %v998_v49  ;;  %v1482_v62 = vmul.f32 %v2752_v37, %v1005_v52  ;;  %v1129_v0 = vadd.f32 %v1128_v55, %v1127_v47  ;;  %v1134_v1 = vadd.f32 %v1133_v56, %v1132_v32 }
  0xd5   : > { %v1140_v2 = vrot.slane %v1139_v57, 4  ;;  %v1483_v3 = vmul.f32 %v2752_v37, %v1012_v58  ;;  %v1754_v4 = vsel %vm1694_vm5, %v1480_v59, %v1753_v61  ;;  %v1146_v5 = vsel %vm508_vm0, %v471_v53, 0.0 }
  0xd6   : > { %v1153_v6 = vsel %vm508_vm0, %v472_v54, 0.0  ;;  %v1755_v7 = vsel %vm1696_vm6, %v1481_v60, %v1754_v4  ;;  %v1130_v9 = vrot.slane %v1129_v0, 1  ;;  %v1135_v10 = vrot.slane %v1134_v1, 2  ;;  %v486_v60 = vld [vmem:[%s2711_s15 + $0x350] sm:$0xff] }
  0xd7   : > { %v1141_v11 = vadd.f32 %v1140_v2, %v1139_v57  ;;  %v1756_v12 = vsel %vm1698_vm7, %v1482_v62, %v1755_v7  ;;  %v1147_v14 = vrot.slane %v1146_v5, 4  ;;  %v1154_v15 = vrot.slane %v1153_v6, 4 }
  0xd8   : > { %v1160_v16 = vsel %vm508_vm0, %v473_v63, 0.0  ;;  %v1757_v17 = vsel %vm1700_vm8, %v1483_v3, %v1756_v12  ;;  %v1131_v18 = vadd.f32 %v1130_v9, %v1129_v0  ;;  %v1136_v19 = vadd.f32 %v1135_v10, %v1134_v1 }
  0xd9   : > { %v1142_v20 = vrot.slane %v1141_v11, 2  ;;  %1823 = vrot.lane.b32.xlu2 %v1757_v17, %s2647_s16  ;;  %v1148_v21 = vadd.f32 %v1147_v14, %v1146_v5  ;;  %v1155_v22 = vadd.f32 %v1154_v15, %v1153_v6  ;;  %v1161_v23 = vrot.slane %v1160_v16, 4  ;;  %v487_v6 = vld [vmem:[%s2711_s15 + $0x358] sm:$0xff]  ;;  %v489_v17 = vld [vmem:[%s2711_s15 + $0x368] sm:$0xff] }
  0xda   : > { %v1167_v24 = vsel %vm508_vm0, %v474_v8, 0.0  ;;  %v1137_v25 = vrot.slane %v1136_v19, 1  ;;  %v1174_v28 = vsel %vm508_vm0, %v475_v13, 0.0  ;;  %v1500_v39 = vmul.f32 %v2752_v37, %v1131_v18 }
  0xdb   : > { %v1143_v26 = vadd.f32 %v1142_v20, %v1141_v11  ;;  %v1168_v27 = vrot.slane %v1167_v24, 4  ;;  %v1149_v29 = vrot.slane %v1148_v21, 2  ;;  %v1156_v30 = vrot.slane %v1155_v22, 2 }
  0xdc   : > { %v1162_v31 = vadd.f32 %v1161_v23, %v1160_v16  ;;  %v1175_v33 = vrot.slane %v1174_v28, 4  ;;  %v1138_v35 = vadd.f32 %v1137_v25, %v1136_v19  ;;  %v1237_v47 = vsel %vm508_vm0, %v484_v34, 0.0  ;;  %v488_v16 = vld [vmem:[%s2711_s15 + $0x360] sm:$0xff]  ;;  %v490_v25 = vld [vmem:[%s2711_s15 + $0x370] sm:$0xff] }
  0xdd   : > { %v1144_v36 = vrot.slane %v1143_v26, 1  ;;  %v1169_v38 = vadd.f32 %v1168_v27, %v1167_v24  ;;  %v1150_v40 = vadd.f32 %v1149_v29, %v1148_v21  ;;  %v1157_v41 = vadd.f32 %v1156_v30, %v1155_v22 }
  0xde   : > { %v1163_v42 = vrot.slane %v1162_v31, 2  ;;  %v1176_v43 = vadd.f32 %v1175_v33, %v1174_v28  ;;  %v1501_v46 = vmul.f32 %v2752_v37, %v1138_v35  ;;  %v1238_v55 = vrot.slane %v1237_v47, 4 }
  0xdf   : > { %v1145_v44 = vadd.f32 %v1144_v36, %v1143_v26  ;;  %v1170_v45 = vrot.slane %v1169_v38, 2  ;;  %v1151_v32 = vrot.slane %v1150_v40, 1  ;;  %v1158_v48 = vrot.slane %v1157_v41, 1  ;;  %v491_v26 = vld [vmem:[%s2711_s15 + $0x378] sm:$0xff] }
  0xe0   : > { %v1164_v49 = vadd.f32 %v1163_v42, %v1162_v31  ;;  %v1177_v50 = vrot.slane %v1176_v43, 2  ;;  %v1772_v54 = vsel %vm1688_vm2, %v1501_v46, %v1500_v39  ;;  %v1239_v63 = vadd.f32 %v1238_v55, %v1237_v47 }
  0xe1   : > { %v1171_v52 = vadd.f32 %v1170_v45, %v1169_v38  ;;  %v1502_v53 = vmul.f32 %v2752_v37, %v1145_v44  ;;  %v1152_v56 = vadd.f32 %v1151_v32, %v1150_v40  ;;  %v1159_v57 = vadd.f32 %v1158_v48, %v1157_v41  ;;  %v476_v32 = vld [vmem:[%s2711_s15 + $0x300] sm:$0xff] }
  0xe2   : > { %v1165_v58 = vrot.slane %v1164_v49, 1  ;;  %v1178_v59 = vadd.f32 %v1177_v50, %v1176_v43  ;;  %v1244_v0 = vsel %vm508_vm0, %v485_v51, 0.0  ;;  %v1240_v7 = vrot.slane %v1239_v63, 2 }
  0xe3   : > { %v1172_v61 = vrot.slane %v1171_v52, 1  ;;  %v1773_v62 = vsel %vm1690_vm3, %v1502_v53, %v1772_v54  ;;  %v1503_v3 = vmul.f32 %v2752_v37, %v1152_v56  ;;  %v1504_v4 = vmul.f32 %v2752_v37, %v1159_v57 }
  0xe4   : > { %v1166_v1 = vadd.f32 %v1165_v58, %v1164_v49  ;;  %v1179_v2 = vrot.slane %v1178_v59, 1  ;;  %v1245_v8 = vrot.slane %v1244_v0, 4  ;;  %v1251_v9 = vsel %vm508_vm0, %v486_v60, 0.0 }
  0xe5   : > { %v1173_v5 = vadd.f32 %v1172_v61, %v1171_v52  ;;  %v1774_v12 = vsel %vm1692_vm4, %v1503_v3, %v1773_v62  ;;  %v1252_v13 = vrot.slane %v1251_v9, 4  ;;  %v1241_v18 = vadd.f32 %v1240_v7, %v1239_v63  ;;  %v477_v3 = vld [vmem:[%s2711_s15 + $0x308] sm:$0xff] }
  0xe6   : > { %v1180_v10 = vadd.f32 %v1179_v2, %v1178_v59  ;;  %v1505_v11 = vmul.f32 %v2752_v37, %v1166_v1  ;;  %v1775_v15 = vsel %vm1694_vm5, %v1504_v4, %v1774_v12  ;;  %v1246_v19 = vadd.f32 %v1245_v8, %v1244_v0  ;;  %v478_v12 = vld [vmem:[%s2711_s15 + $0x310] sm:$0xff] }
  0xe7   : > { %v1506_v14 = vmul.f32 %v2752_v37, %v1173_v5  ;;  %v1253_v22 = vadd.f32 %v1252_v13, %v1251_v9  ;;  %v1258_v23 = vsel %vm508_vm0, %v487_v6, 0.0  ;;  %v1242_v27 = vrot.slane %v1241_v18, 1 }
  0xe8   : > { %v1507_v20 = vmul.f32 %v2752_v37, %v1180_v10  ;;  %v1776_v21 = vsel %vm1696_vm6, %v1505_v11, %v1775_v15  ;;  %v1247_v28 = vrot.slane %v1246_v19, 2  ;;  %v1259_v29 = vrot.slane %v1258_v23, 4 }
  0xe9   : > { %v1777_v24 = vsel %vm1698_vm7, %v1506_v14, %v1776_v21  ;;  %v1254_v31 = vrot.slane %v1253_v22, 2  ;;  %v1265_v33 = vsel %vm508_vm0, %v488_v16, 0.0  ;;  %v1272_v34 = vsel %vm508_vm0, %v489_v17, 0.0 }
  0xea   : > { %v1778_v30 = vsel %vm1700_vm8, %v1507_v20, %v1777_v24  ;;  %v1243_v35 = vadd.f32 %v1242_v27, %v1241_v18  ;;  %v1248_v36 = vadd.f32 %v1247_v28, %v1246_v19  ;;  %v1260_v38 = vadd.f32 %v1259_v29, %v1258_v23  ;;  %v479_v20 = vld [vmem:[%s2711_s15 + $0x318] sm:$0xff]  ;;  %v480_v29 = vld [vmem:[%s2711_s15 + $0x320] sm:$0xff] }
  0xeb   : > { %1829 = vrot.lane.b32.xlu0 %v1778_v30, %s2647_s16  ;;  %v1266_v39 = vrot.slane %v1265_v33, 4  ;;  %v1255_v40 = vadd.f32 %v1254_v31, %v1253_v22  ;;  %v1273_v41 = vrot.slane %v1272_v34, 4  ;;  %v1279_v42 = vsel %vm508_vm0, %v490_v25, 0.0 }
  0xec   : > { %v1286_v43 = vsel %vm508_vm0, %v491_v26, 0.0  ;;  %v1249_v44 = vrot.slane %v1248_v36, 1  ;;  %v1261_v45 = vrot.slane %v1260_v38, 2  ;;  %v1280_v47 = vrot.slane %v1279_v42, 4 }
  0xed   : > { %v1267_v46 = vadd.f32 %v1266_v39, %v1265_v33  ;;  %v1256_v48 = vrot.slane %v1255_v40, 1  ;;  %v1274_v49 = vadd.f32 %v1273_v41, %v1272_v34  ;;  %v1287_v50 = vrot.slane %v1286_v43, 4  ;;  %v482_v41 = vld [vmem:[%s2711_s15 + $0x330] sm:$0xff] }
  0xee   : > { %v1516_v51 = vmul.f32 %v2752_v37, %v1243_v35  ;;  %v1250_v52 = vadd.f32 %v1249_v44, %v1248_v36  ;;  %v1262_v53 = vadd.f32 %v1261_v45, %v1260_v38  ;;  %v1281_v55 = vadd.f32 %v1280_v47, %v1279_v42 }
  0xef   : > { %v1268_v54 = vrot.slane %v1267_v46, 2  ;;  %v1257_v56 = vadd.f32 %v1256_v48, %v1255_v40  ;;  %v1275_v57 = vrot.slane %v1274_v49, 2  ;;  %v1288_v58 = vadd.f32 %v1287_v50, %v1286_v43  ;;  %v481_v40 = vld [vmem:[%s2711_s15 + $0x328] sm:$0xff]  ;;  %v483_v48 = vld [vmem:[%s2711_s15 + $0x338] sm:$0xff] }
  0xf0   : > { %v1181_v59 = vsel %vm508_vm0, %v476_v32, 0.0  ;;  %v1263_v60 = vrot.slane %v1262_v53, 1  ;;  %v1282_v62 = vrot.slane %v1281_v55, 2  ;;  %v1517_v63 = vmul.f32 %v2752_v37, %v1250_v52 }
  0xf1   : > { %v1269_v61 = vadd.f32 %v1268_v54, %v1267_v46  ;;  %v1276_v0 = vadd.f32 %v1275_v57, %v1274_v49  ;;  %v1289_v1 = vrot.slane %v1288_v58, 2  ;;  %v1518_v2 = vmul.f32 %v2752_v37, %v1257_v56 }
  0xf2   : > { %v1182_v4 = vrot.slane %v1181_v59, 4  ;;  %v1264_v5 = vadd.f32 %v1263_v60, %v1262_v53  ;;  %v1283_v7 = vadd.f32 %v1282_v62, %v1281_v55  ;;  %v1786_v8 = vsel %vm1688_vm2, %v1517_v63, %v1516_v51  ;;  %v500_v60 = vld [vmem:[%s2711_s15 + $0x3c0] sm:$0xff] }
  0xf3   : > { %v1270_v6 = vrot.slane %v1269_v61, 1  ;;  %v1277_v9 = vrot.slane %v1276_v0, 1  ;;  %v1290_v10 = vadd.f32 %v1289_v1, %v1288_v58  ;;  %v1787_v11 = vsel %vm1690_vm3, %v1518_v2, %v1786_v8 }
  0xf4   : > { %v1183_v13 = vadd.f32 %v1182_v4, %v1181_v59  ;;  %v1284_v15 = vrot.slane %v1283_v7, 1  ;;  %v1519_v16 = vmul.f32 %v2752_v37, %v1264_v5  ;;  %v1188_v17 = vsel %vm508_vm0, %v477_v3, 0.0 }
  0xf5   : > { %v1271_v14 = vadd.f32 %v1270_v6, %v1269_v61  ;;  %v1278_v18 = vadd.f32 %v1277_v9, %v1276_v0  ;;  %v1291_v19 = vrot.slane %v1290_v10, 1  ;;  %v1189_v22 = vrot.slane %v1188_v17, 4 }
  0xf6   : > { %v1184_v21 = vrot.slane %v1183_v13, 2  ;;  %v1285_v23 = vadd.f32 %v1284_v15, %v1283_v7  ;;  %v1788_v25 = vsel %vm1692_vm4, %v1519_v16, %v1787_v11  ;;  %v1195_v26 = vsel %vm508_vm0, %v478_v12, 0.0 }
  0xf7   : > { %v1520_v24 = vmul.f32 %v2752_v37, %v1271_v14  ;;  %v1292_v27 = vadd.f32 %v1291_v19, %v1290_v10  ;;  %v1521_v28 = vmul.f32 %v2752_v37, %v1278_v18  ;;  %v1190_v31 = vadd.f32 %v1189_v22, %v1188_v17  ;;  %v1558_v14 = vld [vmem:[%s3523_s3 + $0x10] sm:$0xff]  ;;  %v501_v18 = vld [vmem:[%s2711_s15 + $0x3c8] sm:$0xff] }
  0xf8   : > { %v1185_v30 = vadd.f32 %v1184_v21, %v1183_v13  ;;  %v1522_v33 = vmul.f32 %v2752_v37, %v1285_v23  ;;  %v1196_v35 = vrot.slane %v1195_v26, 4  ;;  %v1202_v36 = vsel %vm508_vm0, %v479_v20, 0.0  ;;  %v1559_v13 = vld [vmem:[%s3523_s3 + $0x18] sm:$0xff] }
  0xf9   : > { %v1789_v34 = vsel %vm1694_vm5, %v1520_v24, %v1788_v25  ;;  %v1523_v38 = vmul.f32 %v2752_v37, %v1292_v27  ;;  %v1191_v43 = vrot.slane %v1190_v31, 2  ;;  %v1203_v46 = vrot.slane %v1202_v36, 4  ;;  %1932 = vmatpush.msra.mxu0 %v1559_v13  ;;  %2581 = vmatpush.msra.mxu3 %v1559_v13  ;;  %v1557_v24 = vld [vmem:[%s3523_s3 + $0x8] sm:$0xff] }
  0xfa   : > { %v1790_v39 = vsel %vm1696_vm6, %v1521_v28, %v1789_v34  ;;  %v1186_v42 = vrot.slane %v1185_v30, 1  ;;  %v1197_v45 = vadd.f32 %v1196_v35, %v1195_v26  ;;  %v1209_v47 = vsel %vm508_vm0, %v480_v29, 0.0  ;;  %v1556_v35 = vld [vmem:[%s3523_s3] sm:$0xff] }
  0xfb   : > { %v1791_v44 = vsel %vm1698_vm7, %v1522_v33, %v1790_v39  ;;  %v1192_v50 = vadd.f32 %v1191_v43, %v1190_v31  ;;  %v1210_v51 = vrot.slane %v1209_v47, 4  ;;  %v1204_v53 = vadd.f32 %v1203_v46, %v1202_v36  ;;  %1933 = vmatpush.msra.mxu0 %v1558_v14  ;;  %2582 = vmatpush.msra.mxu3 %v1558_v14  ;;  %v502_v33 = vld [vmem:[%s2711_s15 + $0x3d0] sm:$0xff] }
  0xfc   : > { %v1792_v32 = vsel %vm1700_vm8, %v1523_v38, %v1791_v44  ;;  %v1187_v49 = vadd.f32 %v1186_v42, %v1185_v30  ;;  %v1198_v52 = vrot.slane %v1197_v45, 2  ;;  %v1216_v54 = vsel %vm508_vm0, %v481_v40, 0.0  ;;  %v503_v44 = vld [vmem:[%s2711_s15 + $0x3d8] sm:$0xff] }
  0xfd   : > { %1833 = vrot.lane.b32.xlu1 %v1792_v32, %s2647_s16  ;;  %v1223_v55 = vsel %vm508_vm0, %v482_v41, 0.0  ;;  %v1193_v56 = vrot.slane %v1192_v50, 1  ;;  %v1211_v57 = vadd.f32 %v1210_v51, %v1209_v47  ;;  %v1217_v58 = vrot.slane %v1216_v54, 4  ;;  %1934 = vmatpush.msra.mxu0 %v1557_v24  ;;  %v504_v32 = vld [vmem:[%s2711_s15 + $0x3e0] sm:$0xff] }
  0xfe   : > { %v1224_v59 = vrot.slane %v1223_v55, 4  ;;  %v1199_v61 = vadd.f32 %v1198_v52, %v1197_v45  ;;  %v1205_v62 = vrot.slane %v1204_v53, 2  ;;  %v1230_v63 = vsel %vm508_vm0, %v483_v48, 0.0  ;;  %2583 = vmatpush.msra.mxu3 %v1557_v24 }
  0xff   : > { %v1508_v0 = vmul.f32 %v2752_v37, %v1187_v49  ;;  %v1194_v1 = vadd.f32 %v1193_v56, %v1192_v50  ;;  %v1212_v2 = vrot.slane %v1211_v57, 2  ;;  %v1218_v3 = vadd.f32 %v1217_v58, %v1216_v54  ;;  %1935 = vmatpush.msra.mxu0 %v1556_v35 }
 0x100   : > { %v1225_v4 = vadd.f32 %v1224_v59, %v1223_v55  ;;  %v1200_v5 = vrot.slane %v1199_v61, 1  ;;  %v1206_v6 = vadd.f32 %v1205_v62, %v1204_v53  ;;  %v1231_v7 = vrot.slane %v1230_v63, 4  ;;  %2584 = vmatpush.msra.mxu3 %v1556_v35  ;;  %v505_v55 = vld [vmem:[%s2711_s15 + $0x3e8] sm:$0xff] }
 0x101   : > { %v1349_v8 = vsel %vm508_vm0, %v500_v60, 0.0  ;;  %v1213_v9 = vadd.f32 %v1212_v2, %v1211_v57  ;;  %v1219_v10 = vrot.slane %v1218_v3, 2  ;;  %v1509_v12 = vmul.f32 %v2752_v37, %v1194_v1  ;;  %v506_v60 = vld [vmem:[%s2711_s15 + $0x3f0] sm:$0xff] }
 0x102   : > { %v1226_v11 = vrot.slane %v1225_v4, 2  ;;  %v1201_v15 = vadd.f32 %v1200_v5, %v1199_v61  ;;  %v1207_v16 = vrot.slane %v1206_v6, 1  ;;  %v1232_v17 = vadd.f32 %v1231_v7, %v1230_v63 }
 0x103   : > { %v1350_v19 = vrot.slane %v1349_v8, 4  ;;  %v1214_v20 = vrot.slane %v1213_v9, 1  ;;  %v1220_v21 = vadd.f32 %v1219_v10, %v1218_v3  ;;  %v1779_v23 = vsel %vm1688_vm2, %v1509_v12, %v1508_v0 }
 0x104   : > { %v1227_v22 = vadd.f32 %v1226_v11, %v1225_v4  ;;  %v1208_v25 = vadd.f32 %v1207_v16, %v1206_v6  ;;  %v1233_v26 = vrot.slane %v1232_v17, 2  ;;  %v1510_v27 = vmul.f32 %v2752_v37, %v1201_v15  ;;  %v507_v4 = vld [vmem:[%s2711_s15 + $0x3f8] sm:$0xff] }
 0x105   : > { %v1351_v28 = vadd.f32 %v1350_v19, %v1349_v8  ;;  %v1215_v29 = vadd.f32 %v1214_v20, %v1213_v9  ;;  %v1221_v30 = vrot.slane %v1220_v21, 1  ;;  %v1356_v34 = vsel %vm508_vm0, %v501_v18, 0.0  ;;  %v1540_v18 = vld [vmem:[%s3208_s29] sm:$0xff] }
 0x106   : > { %v1228_v31 = vrot.slane %v1227_v22, 1  ;;  %v1234_v36 = vadd.f32 %v1233_v26, %v1232_v17  ;;  %v1511_v38 = vmul.f32 %v2752_v37, %v1208_v25  ;;  %v1780_v39 = vsel %vm1690_vm3, %v1510_v27, %v1779_v23  ;;  %v1808_v17 = vpop.permute.xlu0 %1807 }
 0x107   : > { %v1352_v40 = vrot.slane %v1351_v28, 2  ;;  %v1222_v41 = vadd.f32 %v1221_v30, %v1220_v21  ;;  %v1512_v43 = vmul.f32 %v2752_v37, %v1215_v29  ;;  %v1357_v45 = vrot.slane %v1356_v34, 4 }
 0x108   : > { %v1229_v42 = vadd.f32 %v1228_v31, %v1227_v22  ;;  %v1235_v46 = vrot.slane %v1234_v36, 1  ;;  %v1781_v47 = vsel %vm1692_vm4, %v1511_v38, %v1780_v39  ;;  %v1363_v49 = vsel %vm508_vm0, %v502_v33, 0.0 }
 0x109   : > { %v1353_v48 = vadd.f32 %v1352_v40, %v1351_v28  ;;  %v1513_v50 = vmul.f32 %v2752_v37, %v1222_v41  ;;  %v1782_v52 = vsel %vm1694_vm5, %v1512_v43, %v1781_v47  ;;  %v1358_v53 = vadd.f32 %v1357_v45, %v1356_v34  ;;  %v493_v45 = vld [vmem:[%s2711_s15 + $0x388] sm:$0xff] }
 0x10a   : > { %v1514_v51 = vmul.f32 %v2752_v37, %v1229_v42  ;;  %v1236_v54 = vadd.f32 %v1235_v46, %v1234_v36  ;;  %v1364_v57 = vrot.slane %v1363_v49, 4  ;;  %v1370_v58 = vsel %vm508_vm0, %v503_v44, 0.0  ;;  %v492_v36 = vld [vmem:[%s2711_s15 + $0x380] sm:$0xff] }
 0x10b   : > { %v1354_v56 = vrot.slane %v1353_v48, 1  ;;  %v1783_v59 = vsel %vm1696_vm6, %v1513_v50, %v1782_v52  ;;  %v1359_v61 = vrot.slane %v1358_v53, 2  ;;  %v1371_v62 = vrot.slane %v1370_v58, 4  ;;  %v494_v52 = vld [vmem:[%s2711_s15 + $0x390] sm:$0xff] }
 0x10c   : > { %v1377_v63 = vsel %vm508_vm0, %v504_v32, 0.0  ;;  %v1515_v0 = vmul.f32 %v2752_v37, %v1236_v54  ;;  %v1784_v1 = vsel %vm1698_vm7, %v1514_v51, %v1783_v59  ;;  %v1365_v3 = vadd.f32 %v1364_v57, %v1363_v49 }
 0x10d   : > { %v1355_v2 = vadd.f32 %v1354_v56, %v1353_v48  ;;  %v1360_v5 = vadd.f32 %v1359_v61, %v1358_v53  ;;  %v1372_v6 = vadd.f32 %v1371_v62, %v1370_v58  ;;  %v1378_v7 = vrot.slane %v1377_v63, 4  ;;  %v495_v61 = vld [vmem:[%s2711_s15 + $0x398] sm:$0xff] }
 0x10e   : > { %v1384_v8 = vsel %vm508_vm0, %v505_v55, 0.0  ;;  %v1785_v9 = vsel %vm1700_vm8, %v1515_v0, %v1784_v1  ;;  %v1366_v10 = vrot.slane %v1365_v3, 2  ;;  %v1391_v12 = vsel %vm508_vm0, %v506_v60, 0.0 }
 0x10f   : > { %v1385_v11 = vrot.slane %v1384_v8, 4  ;;  %1831 = vrot.lane.b32.xlu2 %v1785_v9, %s2647_s16  ;;  %v1361_v13 = vrot.slane %v1360_v5, 1  ;;  %v1373_v14 = vrot.slane %v1372_v6, 2  ;;  %v1379_v15 = vadd.f32 %v1378_v7, %v1377_v63 }
 0x110   : > { %v1392_v16 = vrot.slane %v1391_v12, 4  ;;  %v1367_v19 = vadd.f32 %v1366_v10, %v1365_v3  ;;  %v1398_v21 = vsel %vm508_vm0, %v507_v4, 0.0  ;;  %v1532_v22 = vmul.f32 %v2752_v37, %v1355_v2 }
 0x111   : > { %v1386_v20 = vadd.f32 %v1385_v11, %v1384_v8  ;;  %v1362_v23 = vadd.f32 %v1361_v13, %v1360_v5  ;;  %v1374_v24 = vadd.f32 %v1373_v14, %v1372_v6  ;;  %v1380_v25 = vrot.slane %v1379_v15, 2  ;;  %v496_v5 = vld [vmem:[%s2711_s15 + $0x3a0] sm:$0xff]  ;;  %v497_v6 = vld [vmem:[%s2711_s15 + $0x3a8] sm:$0xff]  ;;  %v498_v14 = vld [vmem:[%s2711_s15 + $0x3b0] sm:$0xff] }
 0x112   : > { %v1393_v26 = vadd.f32 %v1392_v16, %v1391_v12  ;;  %v1368_v27 = vrot.slane %v1367_v19, 1  ;;  %v1399_v29 = vrot.slane %v1398_v21, 4  ;;  %v1855_v30 = vsel %vm508_vm0, %v1540_v18, %v1808_v17 }
 0x113   : > { %v1387_v28 = vrot.slane %v1386_v20, 2  ;;  %v1375_v31 = vrot.slane %v1374_v24, 1  ;;  %v1381_v33 = vadd.f32 %v1380_v25, %v1379_v15  ;;  %v1533_v35 = vmul.f32 %v2752_v37, %v1362_v23  ;;  %2531 = vmatmul.msk.f32.vlgmr.msra.gmra.mxu0 %vm1871_vm9, %v1855_v30 }
 0x114   : > { %v1394_v34 = vrot.slane %v1393_v26, 2  ;;  %v1369_v38 = vadd.f32 %v1368_v27, %v1367_v19  ;;  %v1400_v40 = vadd.f32 %v1399_v29, %v1398_v21  ;;  %v1293_v48 = vsel %vm508_vm0, %v492_v36, 0.0 }
 0x115   : > { %v1388_v39 = vadd.f32 %v1387_v28, %v1386_v20  ;;  %v1376_v41 = vadd.f32 %v1375_v31, %v1374_v24  ;;  %v1382_v42 = vrot.slane %v1381_v33, 1  ;;  %v1800_v44 = vsel %vm1688_vm2, %v1533_v35, %v1532_v22  ;;  %v499_v22 = vld [vmem:[%s2711_s15 + $0x3b8] sm:$0xff] }
 0x116   : > { %v1395_v43 = vadd.f32 %v1394_v34, %v1393_v26  ;;  %v1401_v47 = vrot.slane %v1400_v40, 2  ;;  %v1534_v32 = vmul.f32 %v2752_v37, %v1369_v38  ;;  %v1294_v53 = vrot.slane %v1293_v48, 4 }
 0x117   : > { %v1389_v46 = vrot.slane %v1388_v39, 1  ;;  %v1383_v49 = vadd.f32 %v1382_v42, %v1381_v33  ;;  %v1535_v51 = vmul.f32 %v2752_v37, %v1376_v41  ;;  %v1300_v57 = vsel %vm508_vm0, %v493_v45, 0.0  ;;  %v1810_v41 = vpop.permute.xlu0 %1809 }
 0x118   : > { %v1396_v50 = vrot.slane %v1395_v43, 1  ;;  %v1402_v55 = vadd.f32 %v1401_v47, %v1400_v40  ;;  %v1801_v56 = vsel %vm1690_vm3, %v1534_v32, %v1800_v44  ;;  %v1295_v62 = vadd.f32 %v1294_v53, %v1293_v48 }
 0x119   : > { %v1390_v54 = vadd.f32 %v1389_v46, %v1388_v39  ;;  %v1536_v59 = vmul.f32 %v2752_v37, %v1383_v49  ;;  %v1802_v60 = vsel %vm1692_vm4, %v1535_v51, %v1801_v56  ;;  %v1301_v1 = vrot.slane %v1300_v57, 4  ;;  %v1541_v46 = vld [vmem:[%s3208_s29 + $0x8] sm:$0xff] }
 0x11a   : > { %v1397_v58 = vadd.f32 %v1396_v50, %v1395_v43  ;;  %v1403_v63 = vrot.slane %v1402_v55, 1  ;;  %v1307_v2 = vsel %vm508_vm0, %v494_v52, 0.0  ;;  %v1296_v7 = vrot.slane %v1295_v62, 2 }
 0x11b   : > { %v1537_v0 = vmul.f32 %v2752_v37, %v1390_v54  ;;  %v1803_v4 = vsel %vm1694_vm5, %v1536_v59, %v1802_v60  ;;  %v1308_v8 = vrot.slane %v1307_v2, 4  ;;  %v1302_v11 = vadd.f32 %v1301_v1, %v1300_v57 }
 0x11c   : > { %v1538_v3 = vmul.f32 %v2752_v37, %v1397_v58  ;;  %v1404_v9 = vadd.f32 %v1403_v63, %v1402_v55  ;;  %v1314_v12 = vsel %vm508_vm0, %v495_v61, 0.0  ;;  %v1297_v15 = vadd.f32 %v1296_v7, %v1295_v62  ;;  %v1812_v62 = vpop.permute.xlu1 %1811 }
 0x11d   : > { %v1804_v10 = vsel %vm1696_vm6, %v1537_v0, %v1803_v4  ;;  %v1309_v16 = vadd.f32 %v1308_v8, %v1307_v2  ;;  %v1315_v17 = vrot.slane %v1314_v12, 4  ;;  %v1303_v19 = vrot.slane %v1302_v11, 2 }
 0x11e   : > { %v1805_v13 = vsel %vm1698_vm7, %v1538_v3, %v1804_v10  ;;  %v1539_v18 = vmul.f32 %v2752_v37, %v1404_v9  ;;  %v1321_v20 = vsel %vm508_vm0, %v496_v5, 0.0  ;;  %v1328_v21 = vsel %vm508_vm0, %v497_v6, 0.0  ;;  %v1542_v6 = vld [vmem:[%s3208_s29 + $0x10] sm:$0xff] }
 0x11f   : > { %v1298_v23 = vrot.slane %v1297_v15, 1  ;;  %v1310_v24 = vrot.slane %v1309_v16, 2  ;;  %v1316_v25 = vadd.f32 %v1315_v17, %v1314_v12  ;;  %v1322_v26 = vrot.slane %v1321_v20, 4 }
 0x120   : > { %v1806_v27 = vsel %vm1700_vm8, %v1539_v18, %v1805_v13  ;;  %v1304_v28 = vadd.f32 %v1303_v19, %v1302_v11  ;;  %v1329_v29 = vrot.slane %v1328_v21, 4  ;;  %v1335_v30 = vsel %vm508_vm0, %v498_v14, 0.0 }
 0x121   : > { %1837 = vrot.lane.b32.xlu0 %v1806_v27, %s2647_s16  ;;  %v1299_v31 = vadd.f32 %v1298_v23, %v1297_v15  ;;  %v1311_v33 = vadd.f32 %v1310_v24, %v1309_v16  ;;  %v1317_v34 = vrot.slane %v1316_v25, 2  ;;  %v1323_v35 = vadd.f32 %v1322_v26, %v1321_v20  ;;  %v1543_v23 = vld [vmem:[%s3208_s29 + $0x18] sm:$0xff]  ;;  %v1544_v26 = vld [vmem:[%s3208_s29 + $0x20] sm:$0xff] }
 0x122   : > { %v1305_v36 = vrot.slane %v1304_v28, 1  ;;  %v1330_v38 = vadd.f32 %v1329_v29, %v1328_v21  ;;  %v1336_v39 = vrot.slane %v1335_v30, 4  ;;  %v1342_v40 = vsel %vm508_vm0, %v499_v22, 0.0  ;;  %v1545_v29 = vld [vmem:[%s3208_s29 + $0x28] sm:$0xff] }
 0x123   : > { %v1312_v42 = vrot.slane %v1311_v33, 1  ;;  %v1318_v43 = vadd.f32 %v1317_v34, %v1316_v25  ;;  %v1324_v44 = vrot.slane %v1323_v35, 2  ;;  %v1343_v45 = vrot.slane %v1342_v40, 4  ;;  %v1816_v25 = vpop.permute.xlu2 %1815 }
 0x124   : > { %v1306_v47 = vadd.f32 %v1305_v36, %v1304_v28  ;;  %v1331_v32 = vrot.slane %v1330_v38, 2  ;;  %v1337_v48 = vadd.f32 %v1336_v39, %v1335_v30  ;;  %v1524_v49 = vmul.f32 %v2752_v37, %v1299_v31  ;;  %v1814_v22 = vpop.permute.xlu1 %1813  ;;  %v1820_v31 = vpop.permute.xlu0 %1819  ;;  %v1547_v36 = vld [vmem:[%s3208_s29 + $0x38] sm:$0xff] }
 0x125   : > { %v1313_v50 = vadd.f32 %v1312_v42, %v1311_v33  ;;  %v1319_v51 = vrot.slane %v1318_v43, 1  ;;  %v1325_v52 = vadd.f32 %v1324_v44, %v1323_v35  ;;  %v1344_v53 = vadd.f32 %v1343_v45, %v1342_v40  ;;  %v1546_v33 = vld [vmem:[%s3208_s29 + $0x30] sm:$0xff]  ;;  %v1548_v40 = vld [vmem:[%s3208_s29 + $0x40] sm:$0xff] }
 0x126   : > { %v1332_v54 = vadd.f32 %v1331_v32, %v1330_v38  ;;  %v1338_v55 = vrot.slane %v1337_v48, 2  ;;  %v1525_v56 = vmul.f32 %v2752_v37, %v1306_v47  ;;  %v1856_v57 = vsel %vm508_vm0, %v1541_v46, %v1810_v41  ;;  %v1552_v46 = vld [vmem:[%s3208_s29 + $0x60] sm:$0xff]  ;;  %v1550_v47 = vld [vmem:[%s3208_s29 + $0x50] sm:$0xff] }
 0x127   : > { %v1320_v58 = vadd.f32 %v1319_v51, %v1318_v43  ;;  %v1326_v59 = vrot.slane %v1325_v52, 1  ;;  %v1345_v60 = vrot.slane %v1344_v53, 2  ;;  %v1526_v61 = vmul.f32 %v2752_v37, %v1313_v50  ;;  %2532 = vmatmul.msk.f32.gmra.mxu0 %vm1871_vm9, %v1856_v57  ;;  %v1549_v43 = vld [vmem:[%s3208_s29 + $0x48] sm:$0xff]  ;;  %v2098_v57 = vld [vmem:[%s3524_s4] sm:$0xff] }
 0x128   : > { %v1333_v63 = vrot.slane %v1332_v54, 1  ;;  %v1339_v0 = vadd.f32 %v1338_v55, %v1337_v48  ;;  %v1793_v1 = vsel %vm1688_vm2, %v1525_v56, %v1524_v49  ;;  %v1857_v14 = vsel %vm508_vm0, %v1542_v6, %v1812_v62  ;;  %v1553_v50 = vld [vmem:[%s3208_s29 + $0x68] sm:$0xff]  ;;  %v1554_v62 = vld [vmem:[%s3208_s29 + $0x70] sm:$0xff] }
 0x129   : > { %v1327_v2 = vadd.f32 %v1326_v59, %v1325_v52  ;;  %v1346_v3 = vadd.f32 %v1345_v60, %v1344_v53  ;;  %v1527_v4 = vmul.f32 %v2752_v37, %v1320_v58  ;;  %v1794_v5 = vsel %vm1690_vm3, %v1526_v61, %v1793_v1  ;;  %v2099_v56 = vld [vmem:[%s3524_s4 + $0x8] sm:$0xff]  ;;  %v2001_v58 = vld [vmem:[%s3308_s12] sm:$0xff]  ;;  %v2003_v1 = vld [vmem:[%s3308_s12 + $0x10] sm:$0xff] }
 0x12a   : > { %v1334_v7 = vadd.f32 %v1333_v63, %v1332_v54  ;;  %v1340_v8 = vrot.slane %v1339_v0, 1  ;;  %v1858_v24 = vsel %vm508_vm0, %v1543_v23, %v1814_v22  ;;  %v1859_v27 = vsel %vm508_vm0, %v1544_v26, %v1816_v25  ;;  %v1551_v54 = vld [vmem:[%s3208_s29 + $0x58] sm:$0xff]  ;;  %2182 = vmatpush.msra.mxu1 %v2099_v56  ;;  %2585 = vmatpush.msrb.mxu3 %v2099_v56  ;;  %v2002_v60 = vld [vmem:[%s3308_s12 + $0x8] sm:$0xff]  ;;  %v2009_v26 = vld [vmem:[%s3308_s12 + $0x40] sm:$0xff] }
 0x12b   : > { %v1347_v9 = vrot.slane %v1346_v3, 1  ;;  %v1528_v10 = vmul.f32 %v2752_v37, %v1327_v2  ;;  %v1795_v11 = vsel %vm1692_vm4, %v1527_v4, %v1794_v5  ;;  %v1818_v28 = vpop.permute.xlu2 %1817  ;;  %v1861_v34 = vsel %vm508_vm0, %v1546_v33, %v1820_v31  ;;  %v2008_v22 = vld [vmem:[%s3308_s12 + $0x38] sm:$0xff]  ;;  %v2010_v31 = vld [vmem:[%s3308_s12 + $0x48] sm:$0xff]  ;;  %v2015_v56 = vld [vmem:[%s3308_s12 + $0x70] sm:$0xff] }
 0x12c   : > { %v1341_v12 = vadd.f32 %v1340_v8, %v1339_v0  ;;  %v1529_v13 = vmul.f32 %v2752_v37, %v1334_v7  ;;  %v1860_v30 = vsel %vm508_vm0, %v1545_v29, %v1818_v28  ;;  %v1822_v35 = vpop.permute.xlu1 %1821  ;;  %v1826_v42 = vpop.permute.xlu0 %1825  ;;  %v2018_v59 = vsel %vm2017_vm10, %v2001_v58, 0.0  ;;  %2183 = vmatpush.msra.mxu1 %v2098_v57  ;;  %2586 = vmatpush.msrb.mxu3 %v2098_v57  ;;  %v2004_v8 = vld [vmem:[%s3308_s12 + $0x18] sm:$0xff] }
 0x12d   : > { %v1348_v15 = vadd.f32 %v1347_v9, %v1346_v3  ;;  %v1796_v16 = vsel %vm1694_vm5, %v1528_v10, %v1795_v11  ;;  %v1862_v38 = vsel %vm508_vm0, %v1547_v36, %v1822_v35  ;;  %v1864_v44 = vsel %vm508_vm0, %v1549_v43, %v1826_v42  ;;  %2019 = vadd.xlane.f32.xlu1 %v2018_v59  ;;  %v1555_v3 = vld [vmem:[%s3208_s29 + $0x78] sm:$0xff]  ;;  %v2005_v10 = vld [vmem:[%s3308_s12 + $0x20] sm:$0xff] }
 0x12e   : > { %v1530_v17 = vmul.f32 %v2752_v37, %v1341_v12  ;;  %v1797_v18 = vsel %vm1696_vm6, %v1529_v13, %v1796_v16  ;;  %v2021_v61 = vsel %vm2017_vm10, %v2002_v60, 0.0  ;;  %v2024_v2 = vsel %vm2017_vm10, %v2003_v1, 0.0  ;;  %v2016_v57 = vld [vmem:[%s3308_s12 + $0x78] sm:$0xff] }
 0x12f   : > { %v1531_v19 = vmul.f32 %v2752_v37, %v1348_v15  ;;  %2533 = vmatmul.msk.f32.gmra.mxu0 %vm1871_vm9, %v1857_v14  ;;  %v2027_v9 = vsel %vm2017_vm10, %v2004_v8, 0.0  ;;  %v2030_v11 = vsel %vm2017_vm10, %v2005_v10, 0.0  ;;  %v2006_v14 = vld [vmem:[%s3308_s12 + $0x28] sm:$0xff]  ;;  %v2039_v23 = vsel %vm2017_vm10, %v2008_v22, 0.0 }
 0x130   : > { %v1798_v20 = vsel %vm1698_vm7, %v1530_v17, %v1797_v18  ;;  %v2033_v15 = vsel %vm2017_vm10, %v2006_v14, 0.0  ;;  %v2007_v18 = vld [vmem:[%s3308_s12 + $0x30] sm:$0xff]  ;;  %v2060_v59 = vsel %vm2017_vm10, %v2015_v56, 0.0  ;;  %v2063_v60 = vsel %vm2017_vm10, %v2016_v57, 0.0 }
 0x131   : > { %v1799_v21 = vsel %vm1700_vm8, %v1531_v19, %v1798_v20  ;;  %v2036_v19 = vsel %vm2017_vm10, %v2007_v18, 0.0 }
 0x132   : > { %1835 = vrot.lane.b32.xlu2 %v1799_v21, %s2647_s16 }
 0x133   : > { %v1824_v39 = vpop.permute.xlu2 %1823 }
 0x134   : > { %v1863_v41 = vsel %vm508_vm0, %v1548_v40, %v1824_v39  ;;  %v2014_v39 = vld [vmem:[%s3308_s12 + $0x68] sm:$0xff] }
 0x135   : > { %2031 = vadd.xlane.f32.xlu1 %v2030_v11 }
 0x137   : > { %2534 = vmatmul.msk.f32.gmra.mxu0 %vm1871_vm9, %v1858_v24 }
 0x13a   : > { %v1828_v45 = vpop.permute.xlu1 %1827 }
 0x13b   : > { %v1865_v49 = vsel %vm508_vm0, %v1550_v47, %v1828_v45 }
 0x13d   : > { %2040 = vadd.xlane.f32.xlu1 %v2039_v23 }
 0x13f   : > { %2535 = vmatmul.msk.f32.gmra.mxu0 %vm1871_vm9, %v1859_v27  ;;  %v2042_v27 = vsel %vm2017_vm10, %v2009_v26, 0.0 }
 0x147   : > { %2536 = vmatmul.msk.f32.gmra.mxu0 %vm1871_vm9, %v1860_v30  ;;  %v2013_v30 = vld [vmem:[%s3308_s12 + $0x60] sm:$0xff] }
 0x148   : > { %v2054_v33 = vsel %vm2017_vm10, %v2013_v30, 0.0 }
 0x14b   : > { %2025 = vadd.xlane.f32.xlu0 %v2024_v2 }
 0x14f   : > { %2537 = vmatmul.msk.f32.gmra.mxu0 %vm1871_vm9, %v1861_v34  ;;  %v2045_v34 = vsel %vm2017_vm10, %v2010_v31, 0.0 }
 0x150   : > { %2046 = vadd.xlane.f32.xlu1 %v2045_v34 }
 0x153   : > { %2037 = vadd.xlane.f32.xlu0 %v2036_v19 }
 0x157   : > { %2538 = vmatmul.msk.f32.gmra.mxu0 %vm1871_vm9, %v1862_v38  ;;  %v2011_v38 = vld [vmem:[%s3308_s12 + $0x50] sm:$0xff] }
 0x158   : > { %v2048_v40 = vsel %vm2017_vm10, %v2011_v38, 0.0  ;;  %2061 = vadd.xlane.f32.xlu1 %v2060_v59 }
 0x15b   : > { %2022 = vadd.xlane.f32.xlu2 %v2021_v61  ;;  %2055 = vadd.xlane.f32.xlu0 %v2054_v33  ;;  %v2272_v61 = vld [vmem:[%s3527_s7 + $0x18] sm:$0xff] }
 0x15c   : > { %2337 = vmatpush.msra.mxu2 %v2272_v61 }
 0x15d   : > { %v1830_v53 = vpop.permute.xlu0 %1829 }
 0x15e   : > { %v1866_v55 = vsel %vm508_vm0, %v1551_v54, %v1830_v53 }
 0x15f   : > { %2539 = vmatmul.msk.f32.gmra.mxu0 %vm1871_vm9, %v1863_v41  ;;  %v2057_v41 = vsel %vm2017_vm10, %v2014_v39, 0.0 }
 0x163   : > { %2028 = vadd.xlane.f32.xlu2 %v2027_v9  ;;  %2049 = vadd.xlane.f32.xlu0 %v2048_v40 }
 0x167   : > { %2540 = vmatmul.msk.f32.gmra.mxu0 %vm1871_vm9, %v1864_v44  ;;  %v2012_v44 = vld [vmem:[%s3308_s12 + $0x58] sm:$0xff] }
 0x168   : > { %v2051_v45 = vsel %vm2017_vm10, %v2012_v44, 0.0 }
 0x169   : > { %v1832_v32 = vpop.permute.xlu2 %1831 }
 0x16a   : > { %v1867_v48 = vsel %vm508_vm0, %v1552_v46, %v1832_v32 }
 0x16b   : > { %2543 = vmatmul.msk.f32.vlgmr.msra.gmra.mxu3 %vm1871_vm9, %v1867_v48  ;;  %2034 = vadd.xlane.f32.xlu2 %v2033_v15 }
 0x16c   : > { %2064 = vadd.xlane.f32.xlu0 %v2063_v60  ;;  %2587 = vmatpush.msra.mxu3 %v2272_v61 }
 0x16f   : > { %v1834_v51 = vpop.permute.xlu1 %1833  ;;  %2541 = vmatmul.msk.f32.gmra.mxu0 %vm1871_vm9, %v1865_v49 }
 0x170   : > { %v1868_v52 = vsel %vm508_vm0, %v1553_v50, %v1834_v51 }
 0x173   : > { %2544 = vmatmul.msk.f32.gmra.mxu3 %vm1871_vm9, %v1868_v52  ;;  %2043 = vadd.xlane.f32.xlu2 %v2042_v27 }
 0x177   : > { %2542 = vmatmul.msk.f32.gmra.mxu0 %vm1871_vm9, %v1866_v55 }
 0x17b   : > { %2058 = vadd.xlane.f32.xlu2 %v2057_v41 }
 0x183   : > { %2052 = vadd.xlane.f32.xlu2 %v2051_v45 }
 0x18c   : > { %v1836_v63 = vpop.permute.xlu2 %1835 }
 0x18d   : > { %v1869_v0 = vsel %vm508_vm0, %v1554_v62, %v1836_v63  ;;  %v2271_v62 = vld [vmem:[%s3527_s7 + $0x10] sm:$0xff]  ;;  %v2270_v63 = vld [vmem:[%s3527_s7 + $0x8] sm:$0xff] }
 0x18e   : > { %2545 = vmatmul.msk.f32.gmra.mxu3 %vm1871_vm9, %v1869_v0  ;;  %2338 = vmatpush.msra.mxu2 %v2271_v62  ;;  %v2269_v0 = vld [vmem:[%s3527_s7] sm:$0xff] }
 0x18f   : > { %2588 = vmatpush.msra.mxu3 %v2271_v62 }
 0x190   : > { %v1937_v4 = vpop.f32.mrf.mxu0  ;;  %2339 = vmatpush.msra.mxu2 %v2270_v63 }
 0x191   : > { %v1985_v6 = vmax.f32 %v1937_v4, 0.0  ;;  %2589 = vmatpush.msra.mxu3 %v2270_v63  ;;  %v3386_v4 = vld [vmem:[%s3525_s5] ss:$0 sm:$0xff] }
 0x192   : > { %2340 = vmatpush.msra.mxu2 %v2269_v0 }
 0x193   : > { %v1838_v5 = vpop.permute.xlu0 %1837  ;;  %2547 = vmatmul.msk.f32.vlgmr.msra.gmra.mxu1 %vm508_vm0, %v1985_v6  ;;  %2590 = vmatpush.msra.mxu3 %v2269_v0 }
 0x194   : > { %v1870_v7 = vsel %vm508_vm0, %v1555_v3, %v1838_v5 }
 0x196   : > { %2546 = vmatmul.msk.f32.gmra.mxu3 %vm1871_vm9, %v1870_v7  ;;  %v3392_v7 = vld [vmem:[%s3526_s6] ss:$0 sm:$0xff] }
 0x1a0   : > { %v2020_v1 = vpop.xlane.xlu1 %2019 }
 0x1a1   : > { %v2066_v2 = vmul.f32 %v2020_v1, %v2752_v37 }
 0x1a3   : > { %v2082_v3 = vmax.f32 %v2066_v2, 0.0 }
 0x1a4   : > { %v1940_v12 = vpop.f32.mrf.mxu0 }
 0x1a5   : > { %v1986_v13 = vmax.f32 %v1940_v12, 0.0  ;;  %v2104_v5 = vmul.f32 %v3386_v4, %v2082_v3 }
 0x1a7   : > { %2548 = vmatmul.msk.f32.gmra.mxu1 %vm508_vm0, %v1986_v13 }
 0x1a8   : > { %v2032_v33 = vpop.xlane.xlu1 %2031 }
 0x1a9   : > { %v2070_v38 = vmul.f32 %v2032_v33, %v2752_v37 }
 0x1ab   : > { %v2086_v41 = vmax.f32 %v2070_v38, 0.0 }
 0x1ac   : > { %v1943_v16 = vpop.f32.mrf.mxu0 }
 0x1ad   : > { %v1987_v17 = vmax.f32 %v1943_v16, 0.0  ;;  %v2108_v45 = vmul.f32 %v3386_v4, %v2086_v41 }
 0x1af   : > { %2549 = vmatmul.msk.f32.gmra.mxu1 %vm508_vm0, %v1987_v17 }
 0x1b0   : > { %v2041_v57 = vpop.xlane.xlu1 %2040 }
 0x1b1   : > { %v2073_v61 = vmul.f32 %v2041_v57, %v2752_v37 }
 0x1b3   : > { %v2089_v0 = vmax.f32 %v2073_v61, 0.0 }
 0x1b4   : > { %v1946_v20 = vpop.f32.mrf.mxu0 }
 0x1b5   : > { %v1988_v21 = vmax.f32 %v1946_v20, 0.0 }
 0x1b7   : > { %2550 = vmatmul.msk.f32.gmra.mxu1 %vm508_vm0, %v1988_v21 }
 0x1bc   : > { %v1949_v24 = vpop.f32.mrf.mxu0 }
 0x1bd   : > { %v1989_v25 = vmax.f32 %v1949_v24, 0.0 }
 0x1be   : > { %v2026_v18 = vpop.xlane.xlu0 %2025 }
 0x1bf   : > { %2551 = vmatmul.msk.f32.gmra.mxu1 %vm508_vm0, %v1989_v25  ;;  %v2068_v20 = vmul.f32 %v2026_v18, %v2752_v37 }
 0x1c1   : > { %v2084_v23 = vmax.f32 %v2068_v20, 0.0 }
 0x1c3   : > { %v2106_v27 = vmul.f32 %v3386_v4, %v2084_v23 }
 0x1c4   : > { %v1952_v28 = vpop.f32.mrf.mxu0 }
 0x1c5   : > { %v1990_v29 = vmax.f32 %v1952_v28, 0.0 }
 0x1c7   : > { %2552 = vmatmul.msk.f32.gmra.mxu1 %vm508_vm0, %v1990_v29 }
 0x1cc   : > { %v1955_v35 = vpop.f32.mrf.mxu0 }
 0x1cd   : > { %v1991_v36 = vmax.f32 %v1955_v35, 0.0 }
 0x1ce   : > { %v2023_v12 = vpop.xlane.xlu2 %2022 }
 0x1cf   : > { %2553 = vmatmul.msk.f32.gmra.mxu1 %vm508_vm0, %v1991_v36  ;;  %v2067_v15 = vmul.f32 %v2023_v12, %v2752_v37  ;;  %v2047_v12 = vpop.xlane.xlu1 %2046 }
 0x1d1   : > { %v2083_v17 = vmax.f32 %v2067_v15, 0.0 }
 0x1d3   : > { %v2105_v19 = vmul.f32 %v3386_v4, %v2083_v17 }
 0x1d4   : > { %v1958_v42 = vpop.f32.mrf.mxu0 }
 0x1d5   : > { %v1992_v43 = vmax.f32 %v1958_v42, 0.0 }
 0x1d6   : > { %v2029_v24 = vpop.xlane.xlu2 %2028 }
 0x1d7   : > { %2554 = vmatmul.msk.f32.gmra.mxu1 %vm508_vm0, %v1992_v43  ;;  %v2069_v28 = vmul.f32 %v2029_v24, %v2752_v37 }
 0x1d9   : > { %v2085_v31 = vmax.f32 %v2069_v28, 0.0 }
 0x1db   : > { %v2107_v36 = vmul.f32 %v3386_v4, %v2085_v31 }
 0x1dc   : > { %v1961_v46 = vpop.f32.mrf.mxu0 }
 0x1dd   : > { %v1993_v47 = vmax.f32 %v1961_v46, 0.0 }
 0x1de   : > { %v2035_v42 = vpop.xlane.xlu2 %2034 }
 0x1df   : > { %2555 = vmatmul.msk.f32.gmra.mxu1 %vm508_vm0, %v1993_v47  ;;  %v2071_v46 = vmul.f32 %v2035_v42, %v2752_v37 }
 0x1e4   : > { %v1964_v32 = vpop.f32.mrf.mxu0 }
 0x1e5   : > { %v1994_v48 = vmax.f32 %v1964_v32, 0.0 }
 0x1e6   : > { %v2044_v1 = vpop.xlane.xlu2 %2043 }
 0x1e7   : > { %2556 = vmatmul.msk.f32.gmra.mxu1 %vm508_vm0, %v1994_v48  ;;  %v2087_v48 = vmax.f32 %v2071_v46, 0.0 }
 0x1ec   : > { %v1967_v49 = vpop.f32.mrf.mxu0 }
 0x1ed   : > { %v1995_v50 = vmax.f32 %v1967_v49, 0.0  ;;  %v2038_v49 = vpop.xlane.xlu0 %2037 }
 0x1ee   : > { %v1973_v51 = vpop.f32.mrf.mxu3  ;;  %v2059_v18 = vpop.xlane.xlu2 %2058 }
 0x1ef   : > { %2557 = vmatmul.msk.f32.gmra.mxu1 %vm508_vm0, %v1995_v50  ;;  %v1997_v58 = vmax.f32 %v1973_v51, 0.0 }
 0x1f4   : > { %v1970_v52 = vpop.f32.mrf.mxu0 }
 0x1f5   : > { %v1996_v53 = vmax.f32 %v1970_v52, 0.0  ;;  %v2109_v52 = vmul.f32 %v3386_v4, %v2087_v48 }
 0x1f6   : > { %v1976_v54 = vpop.f32.mrf.mxu3 }
 0x1f7   : > { %2558 = vmatmul.msk.f32.gmra.mxu1 %vm508_vm0, %v1996_v53  ;;  %v1998_v55 = vmax.f32 %v1976_v54, 0.0  ;;  %v2072_v53 = vmul.f32 %v2038_v49, %v2752_v37 }
 0x1f9   : > { %2560 = vmatmul.msk.f32.vlgmr.msrb.gmra.mxu3 %vm508_vm0, %v1998_v55  ;;  %v2088_v56 = vmax.f32 %v2072_v53, 0.0 }
 0x1fb   : > { %v2110_v60 = vmul.f32 %v3386_v4, %v2088_v56 }
 0x1ff   : > { %2559 = vmatmul.msk.f32.gmra.mxu1 %vm508_vm0, %v1997_v58 }
 0x210   : > { %v2185_v9 = vpop.f32.mrf.mxu1 }
 0x211   : > { %v1979_v6 = vpop.f32.mrf.mxu3  ;;  %v2186_v10 = vadd.f32 %v2185_v9, %v2104_v5  ;;  %v2111_v5 = vmul.f32 %v3386_v4, %v2089_v0  ;;  %v2056_v9 = vpop.xlane.xlu0 %2055 }
 0x212   : > { %v1999_v8 = vmax.f32 %v1979_v6, 0.0  ;;  %v2074_v6 = vmul.f32 %v2044_v1, %v2752_v37 }
 0x213   : > { %v2237_v11 = vadd.f32 %v3392_v7, %v2186_v10 }
 0x214   : > { %2561 = vmatmul.msk.f32.gmra.mxu3 %vm508_vm0, %v1999_v8 }
 0x215   : > { %v2253_v13 = vmax.f32 %v2237_v11, 0.0  ;;  %v2090_v11 = vmax.f32 %v2074_v6, 0.0 }
 0x217   : > { %2563 = vmatmul.msk.f32.vlgmr.msra.gmra.mxu2 %vm1871_vm9, %v2253_v13  ;;  %v2112_v15 = vmul.f32 %v3386_v4, %v2090_v11 }
 0x219   : > { %v1982_v14 = vpop.f32.mrf.mxu3 }
 0x21a   : > { %v2000_v16 = vmax.f32 %v1982_v14, 0.0 }
 0x21c   : > { %2562 = vmatmul.msk.f32.gmra.mxu3 %vm508_vm0, %v2000_v16  ;;  %v2075_v16 = vmul.f32 %v2047_v12, %v2752_v37 }
 0x21e   : > { %v2091_v20 = vmax.f32 %v2075_v16, 0.0 }
 0x220   : > { %v2113_v24 = vmul.f32 %v3386_v4, %v2091_v20 }
 0x224   : > { %v2188_v21 = vpop.f32.mrf.mxu1 }
 0x225   : > { %v2189_v22 = vadd.f32 %v2188_v21, %v2105_v19  ;;  %v2050_v21 = vpop.xlane.xlu0 %2049 }
 0x227   : > { %v2238_v25 = vadd.f32 %v3392_v7, %v2189_v22 }
 0x229   : > { %v2254_v26 = vmax.f32 %v2238_v25, 0.0  ;;  %v2076_v25 = vmul.f32 %v2050_v21, %v2752_v37 }
 0x22b   : > { %2564 = vmatmul.msk.f32.gmra.mxu2 %vm1871_vm9, %v2254_v26  ;;  %v2092_v28 = vmax.f32 %v2076_v25, 0.0 }
 0x22c   : > { %v2191_v29 = vpop.f32.mrf.mxu1 }
 0x22d   : > { %v2192_v30 = vadd.f32 %v2191_v29, %v2106_v27  ;;  %v2053_v29 = vpop.xlane.xlu2 %2052  ;;  %v2114_v33 = vmul.f32 %v3386_v4, %v2092_v28 }
 0x22f   : > { %v2239_v34 = vadd.f32 %v3392_v7, %v2192_v30 }
 0x231   : > { %v2255_v35 = vmax.f32 %v2239_v34, 0.0  ;;  %v2077_v34 = vmul.f32 %v2053_v29, %v2752_v37 }
 0x233   : > { %2565 = vmatmul.msk.f32.gmra.mxu2 %vm1871_vm9, %v2255_v35  ;;  %v2093_v38 = vmax.f32 %v2077_v34, 0.0 }
 0x234   : > { %v2194_v39 = vpop.f32.mrf.mxu1 }
 0x235   : > { %v2195_v40 = vadd.f32 %v2194_v39, %v2107_v36  ;;  %v2115_v42 = vmul.f32 %v3386_v4, %v2093_v38 }
 0x237   : > { %v2240_v43 = vadd.f32 %v3392_v7, %v2195_v40  ;;  %v2078_v40 = vmul.f32 %v2056_v9, %v2752_v37 }
 0x239   : > { %v2256_v44 = vmax.f32 %v2240_v43, 0.0  ;;  %v2079_v43 = vmul.f32 %v2059_v18, %v2752_v37 }
 0x23b   : > { %2566 = vmatmul.msk.f32.gmra.mxu2 %vm1871_vm9, %v2256_v44 }
 0x23c   : > { %v2197_v47 = vpop.f32.mrf.mxu1 }
 0x23d   : > { %v2198_v32 = vadd.f32 %v2197_v47, %v2108_v45  ;;  %v2094_v45 = vmax.f32 %v2078_v40, 0.0  ;;  %v2095_v47 = vmax.f32 %v2079_v43, 0.0 }
 0x23f   : > { %v2241_v50 = vadd.f32 %v3392_v7, %v2198_v32  ;;  %v2116_v49 = vmul.f32 %v3386_v4, %v2094_v45 }
 0x241   : > { %v2257_v51 = vmax.f32 %v2241_v50, 0.0  ;;  %v2117_v50 = vmul.f32 %v3386_v4, %v2095_v47 }
 0x243   : > { %2567 = vmatmul.msk.f32.gmra.mxu2 %vm1871_vm9, %v2257_v51 }
 0x244   : > { %v2200_v54 = vpop.f32.mrf.mxu1 }
 0x245   : > { %v2201_v55 = vadd.f32 %v2200_v54, %v2109_v52 }
 0x247   : > { %v2242_v58 = vadd.f32 %v3392_v7, %v2201_v55 }
 0x249   : > { %v2258_v59 = vmax.f32 %v2242_v58, 0.0 }
 0x24b   : > { %2568 = vmatmul.msk.f32.gmra.mxu2 %vm1871_vm9, %v2258_v59  ;;  %v2062_v59 = vpop.xlane.xlu1 %2061 }
 0x24c   : > { %v2203_v62 = vpop.f32.mrf.mxu1 }
 0x24d   : > { %v2204_v63 = vadd.f32 %v2203_v62, %v2110_v60  ;;  %v2080_v60 = vmul.f32 %v2062_v59, %v2752_v37  ;;  %v2065_v62 = vpop.xlane.xlu0 %2064 }
 0x24e   : > { %v2081_v0 = vmul.f32 %v2065_v62, %v2752_v37 }
 0x24f   : > { %v2243_v2 = vadd.f32 %v3392_v7, %v2204_v63  ;;  %v2096_v61 = vmax.f32 %v2080_v60, 0.0 }
 0x251   : > { %v2259_v3 = vmax.f32 %v2243_v2, 0.0  ;;  %v2118_v63 = vmul.f32 %v3386_v4, %v2096_v61 }
 0x253   : > { %2569 = vmatmul.msk.f32.gmra.mxu2 %vm1871_vm9, %v2259_v3  ;;  %v2097_v3 = vmax.f32 %v2081_v0, 0.0 }
 0x254   : > { %v2206_v8 = vpop.f32.mrf.mxu1 }
 0x255   : > { %v2207_v10 = vadd.f32 %v2206_v8, %v2111_v5  ;;  %v3456_v5 = vld [vmem:[%s3528_s8] ss:$0 sm:$0xff]  ;;  %v2119_v9 = vmul.f32 %v3386_v4, %v2097_v3 }
 0x257   : > { %v2244_v13 = vadd.f32 %v3392_v7, %v2207_v10 }
 0x259   : > { %v2260_v14 = vmax.f32 %v2244_v13, 0.0 }
 0x25b   : > { %2570 = vmatmul.msk.f32.gmra.mxu2 %vm1871_vm9, %v2260_v14 }
 0x25c   : > { %v2209_v17 = vpop.f32.mrf.mxu1 }
 0x25d   : > { %v2210_v19 = vadd.f32 %v2209_v17, %v2112_v15 }
 0x25f   : > { %v2245_v22 = vadd.f32 %v3392_v7, %v2210_v19 }
 0x261   : > { %v2261_v23 = vmax.f32 %v2245_v22, 0.0 }
 0x263   : > { %2571 = vmatmul.msk.f32.gmra.mxu2 %vm1871_vm9, %v2261_v23 }
 0x264   : > { %v2212_v26 = vpop.f32.mrf.mxu1 }
 0x265   : > { %v2213_v27 = vadd.f32 %v2212_v26, %v2113_v24 }
 0x267   : > { %v2246_v30 = vadd.f32 %v3392_v7, %v2213_v27 }
 0x269   : > { %v2262_v31 = vmax.f32 %v2246_v30, 0.0 }
 0x26b   : > { %2572 = vmatmul.msk.f32.gmra.mxu2 %vm1871_vm9, %v2262_v31 }
 0x26c   : > { %v2215_v35 = vpop.f32.mrf.mxu1 }
 0x26d   : > { %v2216_v36 = vadd.f32 %v2215_v35, %v2114_v33 }
 0x26f   : > { %v2247_v39 = vadd.f32 %v3392_v7, %v2216_v36 }
 0x271   : > { %v2263_v41 = vmax.f32 %v2247_v39, 0.0 }
 0x273   : > { %2573 = vmatmul.msk.f32.gmra.mxu2 %vm1871_vm9, %v2263_v41 }
 0x274   : > { %v2218_v44 = vpop.f32.mrf.mxu1 }
 0x275   : > { %v2219_v46 = vadd.f32 %v2218_v44, %v2115_v42 }
 0x277   : > { %v2248_v32 = vadd.f32 %v3392_v7, %v2219_v46 }
 0x279   : > { %v2264_v48 = vmax.f32 %v2248_v32, 0.0 }
 0x27b   : > { %2574 = vmatmul.msk.f32.gmra.mxu2 %vm1871_vm9, %v2264_v48 }
 0x27c   : > { %v2221_v51 = vpop.f32.mrf.mxu1  ;;  %v2224_v52 = vpop.f32.mrf.mxu3 }
 0x27d   : > { %v2222_v53 = vadd.f32 %v2221_v51, %v2116_v49  ;;  %v2225_v55 = vadd.f32 %v2224_v52, %v2117_v50 }
 0x27f   : > { %v2249_v54 = vadd.f32 %v3392_v7, %v2222_v53  ;;  %v2250_v57 = vadd.f32 %v3392_v7, %v2225_v55 }
 0x281   : > { %v2265_v56 = vmax.f32 %v2249_v54, 0.0  ;;  %v2266_v58 = vmax.f32 %v2250_v57, 0.0 }
 0x283   : > { %2575 = vmatmul.msk.f32.vlgmr.msra.gmra.mxu3 %vm1871_vm9, %v2265_v56 }
 0x28b   : > { %2576 = vmatmul.msk.f32.gmra.mxu3 %vm1871_vm9, %v2266_v58 }
 0x297   : > { %v2227_v1 = vpop.f32.mrf.mxu3 }
 0x298   : > { %v2228_v2 = vadd.f32 %v2227_v1, %v2118_v63 }
 0x29a   : > { %v2251_v6 = vadd.f32 %v3392_v7, %v2228_v2  ;;  %v2342_v10 = vpop.f32.mrf.mxu2 }
 0x29b   : > { %v2343_v11 = vadd.f32 %v3456_v5, %v2342_v10 }
 0x29c   : > { %v2267_v8 = vmax.f32 %v2251_v6, 0.0 }
 0x29d   : > { %v2390_v12 = vmul.f32 1.442695, %v2343_v11 }
 0x29e   : > { %2577 = vmatmul.msk.f32.gmra.mxu3 %vm1871_vm9, %v2267_v8 }
 0x29f   : > { %v2230_v37 = vpop.f32.mrf.mxu3  ;;  %2606 = vpow2.f32 %v2390_v12 }
 0x2a0   : > { %v2231_v13 = vadd.f32 %v2230_v37, %v2119_v9 }
 0x2a2   : > { %v2252_v14 = vadd.f32 %v3392_v7, %v2231_v13 }
 0x2a4   : > { %v2268_v15 = vmax.f32 %v2252_v14, 0.0 }
 0x2a5   : > { %v2607_v4 = vpop.eup %2606 }
 0x2a6   : > { %2578 = vmatmul.msk.f32.gmra.mxu3 %vm1871_vm9, %v2268_v15  ;;  %2422 = vst.msk [vmem:[%s3467_s14] sm:$0xff] %vm2017_vm10, %v2607_v4 }
 0x2ae   : > { %v2345_v16 = vpop.f32.mrf.mxu2 }
 0x2af   : > { %v2346_v17 = vadd.f32 %v3456_v5, %v2345_v16 }
 0x2b1   : > { %v2392_v18 = vmul.f32 1.442695, %v2346_v17 }
 0x2b3   : > { %2608 = vpow2.f32 %v2392_v18 }
 0x2b6   : > { %v2348_v7 = vpop.f32.mrf.mxu2 }
 0x2b7   : > { %v2349_v19 = vadd.f32 %v3456_v5, %v2348_v7 }
 0x2b9   : > { %v2609_v20 = vpop.eup %2608  ;;  %v2394_v21 = vmul.f32 1.442695, %v2349_v19 }
 0x2ba   : > { %2423 = vst.msk [vmem:[%s3467_s14 + $0x8] sm:$0xff] %vm2017_vm10, %v2609_v20 }
 0x2bb   : > { %2610 = vpow2.f32 %v2394_v21 }
 0x2be   : > { %v2351_v22 = vpop.f32.mrf.mxu2 }
 0x2bf   : > { %v2352_v23 = vadd.f32 %v3456_v5, %v2351_v22 }
 0x2c1   : > { %v2611_v24 = vpop.eup %2610  ;;  %v2396_v25 = vmul.f32 1.442695, %v2352_v23 }
 0x2c2   : > { %2424 = vst.msk [vmem:[%s3467_s14 + $0x10] sm:$0xff] %vm2017_vm10, %v2611_v24 }
 0x2c3   : > { %2612 = vpow2.f32 %v2396_v25 }
 0x2c6   : > { %v2354_v26 = vpop.f32.mrf.mxu2 }
 0x2c7   : > { %v2355_v27 = vadd.f32 %v3456_v5, %v2354_v26 }
 0x2c9   : > { %v2613_v28 = vpop.eup %2612  ;;  %v2398_v29 = vmul.f32 1.442695, %v2355_v27 }
 0x2ca   : > { %2425 = vst.msk [vmem:[%s3467_s14 + $0x18] sm:$0xff] %vm2017_vm10, %v2613_v28 }
 0x2cb   : > { %2614 = vpow2.f32 %v2398_v29 }
 0x2ce   : > { %v2357_v30 = vpop.f32.mrf.mxu2 }
 0x2cf   : > { %v2358_v31 = vadd.f32 %v3456_v5, %v2357_v30 }
 0x2d1   : > { %v2615_v33 = vpop.eup %2614  ;;  %v2400_v34 = vmul.f32 1.442695, %v2358_v31 }
 0x2d2   : > { %2426 = vst.msk [vmem:[%s3467_s14 + $0x20] sm:$0xff] %vm2017_vm10, %v2615_v33 }
 0x2d3   : > { %2616 = vpow2.f32 %v2400_v34 }
 0x2d6   : > { %v2360_v35 = vpop.f32.mrf.mxu2 }
 0x2d7   : > { %v2361_v36 = vadd.f32 %v3456_v5, %v2360_v35 }
 0x2d9   : > { %v2617_v38 = vpop.eup %2616  ;;  %v2402_v39 = vmul.f32 1.442695, %v2361_v36 }
 0x2da   : > { %2427 = vst.msk [vmem:[%s3467_s14 + $0x28] sm:$0xff] %vm2017_vm10, %v2617_v38 }
 0x2db   : > { %2618 = vpow2.f32 %v2402_v39 }
 0x2de   : > { %v2363_v40 = vpop.f32.mrf.mxu2 }
 0x2df   : > { %v2364_v41 = vadd.f32 %v3456_v5, %v2363_v40 }
 0x2e1   : > { %v2619_v42 = vpop.eup %2618  ;;  %v2404_v43 = vmul.f32 1.442695, %v2364_v41 }
 0x2e2   : > { %2428 = vst.msk [vmem:[%s3467_s14 + $0x30] sm:$0xff] %vm2017_vm10, %v2619_v42 }
 0x2e3   : > { %2620 = vpow2.f32 %v2404_v43 }
 0x2e6   : > { %v2366_v44 = vpop.f32.mrf.mxu2 }
 0x2e7   : > { %v2367_v45 = vadd.f32 %v3456_v5, %v2366_v44 }
 0x2e9   : > { %v2621_v46 = vpop.eup %2620  ;;  %v2406_v47 = vmul.f32 1.442695, %v2367_v45 }
 0x2ea   : > { %2429 = vst.msk [vmem:[%s3467_s14 + $0x38] sm:$0xff] %vm2017_vm10, %v2621_v46 }
 0x2eb   : > { %2622 = vpow2.f32 %v2406_v47 }
 0x2ee   : > { %v2369_v32 = vpop.f32.mrf.mxu2 }
 0x2ef   : > { %v2370_v48 = vadd.f32 %v3456_v5, %v2369_v32 }
 0x2f1   : > { %v2623_v49 = vpop.eup %2622  ;;  %v2408_v50 = vmul.f32 1.442695, %v2370_v48 }
 0x2f2   : > { %2430 = vst.msk [vmem:[%s3467_s14 + $0x40] sm:$0xff] %vm2017_vm10, %v2623_v49 }
 0x2f3   : > { %2624 = vpow2.f32 %v2408_v50 }
 0x2f6   : > { %v2372_v51 = vpop.f32.mrf.mxu2 }
 0x2f7   : > { %v2373_v52 = vadd.f32 %v3456_v5, %v2372_v51 }
 0x2f9   : > { %v2625_v53 = vpop.eup %2624  ;;  %v2410_v54 = vmul.f32 1.442695, %v2373_v52 }
 0x2fa   : > { %2431 = vst.msk [vmem:[%s3467_s14 + $0x48] sm:$0xff] %vm2017_vm10, %v2625_v53 }
 0x2fb   : > { %2626 = vpow2.f32 %v2410_v54 }
 0x2fe   : > { %v2375_v55 = vpop.f32.mrf.mxu2 }
 0x2ff   : > { %v2376_v56 = vadd.f32 %v3456_v5, %v2375_v55 }
 0x301   : > { %v2627_v57 = vpop.eup %2626  ;;  %v2412_v58 = vmul.f32 1.442695, %v2376_v56 }
 0x302   : > { %2432 = vst.msk [vmem:[%s3467_s14 + $0x50] sm:$0xff] %vm2017_vm10, %v2627_v57 }
 0x303   : > { %2628 = vpow2.f32 %v2412_v58 }
 0x306   : > { %v2378_v59 = vpop.f32.mrf.mxu3 }
 0x307   : > { %v2379_v60 = vadd.f32 %v3456_v5, %v2378_v59 }
 0x309   : > { %v2629_v61 = vpop.eup %2628  ;;  %v2414_v62 = vmul.f32 1.442695, %v2379_v60 }
 0x30a   : > { %2433 = vst.msk [vmem:[%s3467_s14 + $0x58] sm:$0xff] %vm2017_vm10, %v2629_v61 }
 0x30b   : > { %2630 = vpow2.f32 %v2414_v62 }
 0x30e   : > { %v2381_v63 = vpop.f32.mrf.mxu3 }
 0x30f   : > { %v2382_v0 = vadd.f32 %v3456_v5, %v2381_v63 }
 0x311   : > { %v2631_v1 = vpop.eup %2630  ;;  %v2416_v2 = vmul.f32 1.442695, %v2382_v0 }
 0x312   : > { %2434 = vst.msk [vmem:[%s3467_s14 + $0x60] sm:$0xff] %vm2017_vm10, %v2631_v1 }
 0x313   : > { %2632 = vpow2.f32 %v2416_v2 }
 0x319   : > { %v2633_v3 = vpop.eup %2632 }
 0x31a   : > { %2435 = vst.msk [vmem:[%s3467_s14 + $0x68] sm:$0xff] %vm2017_vm10, %v2633_v3 }
 0x321   : > { %v2384_v6 = vpop.f32.mrf.mxu3 }
 0x322   : > { %v2385_v8 = vadd.f32 %v3456_v5, %v2384_v6 }
 0x324   : > { %v2418_v9 = vmul.f32 1.442695, %v2385_v8 }
 0x326   : > { %2634 = vpow2.f32 %v2418_v9 }
 0x329   : > { %v2387_v10 = vpop.f32.mrf.mxu3 }
 0x32a   : > { %v2388_v11 = vadd.f32 %v3456_v5, %v2387_v10 }
 0x32c   : > { %v2635_v37 = vpop.eup %2634  ;;  %v2420_v12 = vmul.f32 1.442695, %v2388_v11 }
 0x32d   : > { %2436 = vst.msk [vmem:[%s3467_s14 + $0x70] sm:$0xff] %vm2017_vm10, %v2635_v37 }
 0x32e   : > { %2636 = vpow2.f32 %v2420_v12 }
 0x334   : > { %v2637_v13 = vpop.eup %2636 }
 0x335   : > { %2437 = vst.msk [vmem:[%s3467_s14 + $0x78] sm:$0xff] %vm2017_vm10, %v2637_v13 }
 0x336 PF: > { %s19_s30 = sadd.s32 1, %s2644_s30  }
 0x337   : > { %p16_p5 = scmp.ge.s32.totalorder %s19_s30, 6  }
 0x339   :  { %18 = sbr.rel (!%p16_p5) target bundleno = 1 (0x1), region = 92 }

</bundles_post_ra>
